<compile_context>
chip_gen: v7x
topology: tpu7x:2x2x1
jax: 0.10.0
libtpu: 0.0.40
codegen_flags: <defaults>
</compile_context>

<pallas_src>
import functools
import math

import jax
import jax.numpy as jnp
from jax.experimental import pallas as pl
from jax.experimental.pallas import tpu as pltpu


# ----------------------------- packed-slab layout (shared by host & kernel) ----

def _layer_slab_layout(d_inner, d_state, dt_rank, d_conv, d_model, d_ff):
    """Row layout of the per-layer 'small parameters' slab (width = 4*d_inner)."""
    di2 = 2 * d_inner
    entries = [
        ("bin",   1,           2 * di2),                    # in_proj bias (both dirs)
        ("wconv", d_conv,      di2),                         # conv taps (dir2 reversed)
        ("bconv", 1,           di2),
        ("Wdt",   2 * dt_rank, di2),                         # block-diag dt_proj
        ("bdt",   1,           di2),
        ("A_T",   d_state,     di2),                         # -exp(A_log).T, both dirs
        ("Dv",    1,           di2),
        ("bx",    1,           2 * (dt_rank + 2 * d_state)),
        ("bout",  1,           d_model),
        ("n1w",   1,           d_model),
        ("n1b",   1,           d_model),
        ("c1b",   1,           d_ff),
        ("c2b",   1,           d_model),
        ("n2w",   1,           d_model),
        ("n2b",   1,           d_model),
    ]
    layout, row = {}, 0
    for name, nr, w in entries:
        layout[name] = (row, nr, w)
        row += nr
    return layout, row, 2 * di2


# ----------------------------- fused forward kernel -----------------------------

def _fused_forward_kernel(*refs, n_layers, batch, seq_ch, d_inner, d_state,
                          dt_rank, d_conv, pred_len, slab_layout):
    f32 = jnp.float32
    o_ref = refs[-1]
    x_ref, lin1_w_ref, head_w_ref, gslab_ref = refs[0], refs[1], refs[2], refs[3]
    layer_refs = [refs[4 + 6 * l: 4 + 6 * (l + 1)] for l in range(n_layers)]

    Bb, Ls = batch, seq_ch            # batch, mamba "sequence" length (= enc_in)
    N = Bb * Ls                       # number of (channel, batch) token rows
    di2 = 2 * d_inner                 # both directions stacked on lanes
    nxp = dt_rank + 2 * d_state       # x_proj output width per direction

    def mm(a, w, b):
        return jnp.dot(a, w, preferred_element_type=f32) + b

    def layernorm(a, g, b):
        m = jnp.mean(a, axis=-1, keepdims=True)
        c = a - m
        v = jnp.mean(c * c, axis=-1, keepdims=True)
        return c * jax.lax.rsqrt(v + 1e-5) * g + b

    def silu(a):
        return a * jax.nn.sigmoid(a)

    def softplus(a):
        return jnp.maximum(a, 0.0) + jnp.log(1.0 + jnp.exp(-jnp.abs(a)))

    def revblocks(a):
        # reverse the Ls channel blocks (of Bb rows each) along the row axis
        return jnp.concatenate(
            [a[(Ls - 1 - t) * Bb:(Ls - t) * Bb, :] for t in range(Ls)], axis=0)

    # ---- global small params ----
    gslab = gslab_ref[...].astype(f32)               # (4, d_model)
    lin1_b = gslab[0:1, :]
    enc_nw = gslab[1:2, :]
    enc_nb = gslab[2:3, :]
    head_b = gslab[3:4, 0:pred_len]

    # ---- instance norm over the original time axis (last dim of each row) ----
    x = x_ref[...].astype(f32)                       # (N, seq_len)
    mu = jnp.mean(x, axis=-1, keepdims=True)
    xc = x - mu
    var = jnp.mean(xc * xc, axis=-1, keepdims=True)
    sd = jnp.sqrt(var + 1e-5)
    xn = xc / sd

    # ---- lin1: seq_len -> d_model ----
    h = mm(xn, lin1_w_ref[...].astype(f32), lin1_b)  # (N, d_model)

    for (Win_ref, Wx_ref, Wout_ref, c1w_ref, c2w_ref, slab_ref) in layer_refs:
        slab = slab_ref[...].astype(f32)

        def get(name):
            r0, nr, w = slab_layout[name]
            return slab[r0:r0 + nr, :w]

        # ---- fused bidirectional in_proj: columns [xi1 | z1 | xi2 | z2] ----
        xz = mm(h, Win_ref[...].astype(f32), get("bin"))         # (N, 4*d_inner)
        xi1 = xz[:, 0:d_inner]
        xi2 = xz[:, di2:di2 + d_inner]
        z = jnp.concatenate([xz[:, d_inner:di2],
                             xz[:, di2 + d_inner:2 * di2]], axis=-1)

        # ---- depthwise conv along the channel-sequence axis (row stride = batch)
        #      dir1: causal (left zero rows); dir2: anti-causal w/ reversed taps
        #      (right zero rows) == causal conv of mamba2 on the flipped sequence.
        zrows = jnp.zeros(((d_conv - 1) * Bb, d_inner), f32)
        xp = jnp.concatenate(
            [jnp.concatenate([zrows, xi1], axis=0),
             jnp.concatenate([xi2, zrows], axis=0)], axis=-1)    # ((Ls+K-1)*B, 128)
        wc = get("wconv")                                        # (K, 128)
        acc = jnp.zeros((N, di2), f32) + get("bconv")
        for k in range(d_conv):
            acc = acc + xp[k * Bb:k * Bb + N, :] * wc[k:k + 1, :]
        u = silu(acc)                                            # (N, 128), orig order

        # ---- x_proj / dt_proj (block-diagonal over the two directions) ----
        xdbl = mm(u, Wx_ref[...].astype(f32), get("bx"))         # (N, 2*nxp)
        dt_lr = jnp.concatenate([xdbl[:, 0:dt_rank],
                                 xdbl[:, nxp:nxp + dt_rank]], axis=-1)
        dts = softplus(mm(dt_lr, get("Wdt"), get("bdt")))        # (N, 128)
        B1 = xdbl[:, dt_rank:dt_rank + d_state]
        C1 = xdbl[:, dt_rank + d_state:nxp]
        B2 = xdbl[:, nxp + dt_rank:nxp + dt_rank + d_state]
        C2 = xdbl[:, nxp + dt_rank + d_state:2 * nxp]

        A_T = get("A_T")                                         # (d_state, 128)
        Dv = get("Dv")                                           # (1, 128)

        # ---- reorder dir-2 lanes so both directions scan "forward" together:
        #      row-block t of *_c holds original block (Ls-1-t) for direction 2.
        dts_c = jnp.concatenate([dts[:, 0:d_inner],
                                 revblocks(dts[:, d_inner:di2])], axis=-1)
        u_c = jnp.concatenate([u[:, 0:d_inner],
                               revblocks(u[:, d_inner:di2])], axis=-1)
        Bc = jnp.concatenate([B1, revblocks(B2)], axis=-1)       # (N, 2*d_state)
        Cc = jnp.concatenate([C1, revblocks(C2)], axis=-1)
        du = dts_c * u_c

        # ---- hoist all EUP / broadcast work out of the sequential recurrence ----
        dA = [jnp.exp(dts_c * A_T[s:s + 1, :]) for s in range(d_state)]   # (N,128)

        def bcast2(m, s):   # broadcast state-s column of each direction to d_inner lanes
            return jnp.concatenate(
                [jnp.broadcast_to(m[:, s:s + 1], (N, d_inner)),
                 jnp.broadcast_to(m[:, d_state + s:d_state + s + 1], (N, d_inner))],
                axis=-1)

        dBu = [du * bcast2(Bc, s) for s in range(d_state)]                # (N,128)
        Cb = [bcast2(Cc, s) for s in range(d_state)]                      # (N,128)

        # ---- selective scan: d_inner(both dirs)=128 on lanes, d_state unrolled;
        #      each step is pure VPU mul/add on (Bb, 128) row blocks.
        st = [jnp.zeros((Bb, di2), f32) for _ in range(d_state)]
        y1_rows = [None] * Ls
        y2_rows = [None] * Ls
        for t in range(Ls):
            r = t * Bb
            yt = None
            for s in range(d_state):
                st[s] = dA[s][r:r + Bb, :] * st[s] + dBu[s][r:r + Bb, :]
                term = st[s] * Cb[s][r:r + Bb, :]
                yt = term if yt is None else yt + term
            y1_rows[t] = yt[:, 0:d_inner]
            y2_rows[Ls - 1 - t] = yt[:, d_inner:di2]

        y = jnp.concatenate(
            [jnp.concatenate(y1_rows, axis=0),
             jnp.concatenate(y2_rows, axis=0)], axis=-1)          # (N, 128), orig order
        y = (y + u * Dv) * silu(z)                                # D skip + SiLU(z) gate
        new_x = mm(y, Wout_ref[...].astype(f32), get("bout"))     # (N, d_model)

        # ---- residual + norms + pointwise FFN (Conv1d k=1 == Linear) ----
        h = layernorm(h + new_x, get("n1w"), get("n1b"))
        ff = jnp.maximum(mm(h, c1w_ref[...].astype(f32), get("c1b")), 0.0)
        ff = mm(ff, c2w_ref[...].astype(f32), get("c2b"))
        h = layernorm(h + ff, get("n2w"), get("n2b"))

    # ---- encoder final norm, head, de-normalization ----
    h = layernorm(h, enc_nw, enc_nb)
    out = mm(h, head_w_ref[...].astype(f32), head_b)              # (N, pred_len)
    o_ref[...] = (out * sd + mu).astype(o_ref.dtype)


# ----------------------------- wrappers -----------------------------

def model_forward(x, fused, cfg):
    """x: (B, seq_len, enc_in) -> (B, pred_len, enc_in); single fused pallas_call."""
    B, L, D = x.shape
    P = cfg["pred_len"]
    d_model = cfg["d_model"]
    d_inner = cfg["e_fact"] * d_model
    dt_rank = math.ceil(d_model / 16)
    slab_layout, _, _ = _layer_slab_layout(
        d_inner, cfg["d_state"], dt_rank, cfg["dconv"], d_model, cfg["d_ff"])

    # channel-major flattening: row r = d*B + b holds x[b, :, d] (tiny layout glue)
    x_cm = jnp.transpose(x, (2, 0, 1)).reshape(D * B, L)

    flat = [x_cm, fused["lin1_w"], fused["head_w"], fused["gslab"]]
    for lp in fused["layers"]:
        flat.extend(lp)

    kernel = functools.partial(
        _fused_forward_kernel,
        n_layers=len(fused["layers"]), batch=B, seq_ch=D,
        d_inner=d_inner, d_state=cfg["d_state"], dt_rank=dt_rank,
        d_conv=cfg["dconv"], pred_len=P, slab_layout=slab_layout)

    out = pl.pallas_call(
        kernel,
        out_shape=jax.ShapeDtypeStruct((D * B, P), x.dtype),
        in_specs=[pl.BlockSpec(memory_space=pltpu.MemorySpace.VMEM) for _ in flat],
        out_specs=pl.BlockSpec(memory_space=pltpu.MemorySpace.VMEM),
    )(*flat)

    # rows are (channel, batch); back to (B, pred_len, enc_in)
    return jnp.transpose(out.reshape(D, B, P), (1, 2, 0))


def prepare_fused_params(params, cfg):
    """Build direction-fused weights + packed parameter slabs once (host side)."""
    d_model = cfg["d_model"]
    d_state = cfg["d_state"]
    d_conv = cfg["dconv"]
    d_ff = cfg["d_ff"]
    P = cfg["pred_len"]
    d_inner = cfg["e_fact"] * d_model
    dt_rank = math.ceil(d_model / 16)
    nxp = dt_rank + 2 * d_state
    f32 = jnp.float32
    layout, n_rows, width = _layer_slab_layout(
        d_inner, d_state, dt_rank, d_conv, d_model, d_ff)

    def place(slab, name, arr):
        r0, nr, w = layout[name]
        return slab.at[r0:r0 + nr, :w].set(jnp.asarray(arr, f32).reshape(nr, w))

    def fuse_layer(lp):
        m1, m2 = lp["mamba1"], lp["mamba2"]
        Win = jnp.concatenate([m1["in_proj_w"], m2["in_proj_w"]], axis=1)       # (32,256)
        zx = jnp.zeros((d_inner, nxp), f32)
        Wx = jnp.concatenate([jnp.concatenate([m1["x_proj_w"], zx], axis=1),
                              jnp.concatenate([zx, m2["x_proj_w"]], axis=1)], axis=0)
        Wout = jnp.concatenate([m1["out_proj_w"], m2["out_proj_w"]], axis=0)    # (128,32)
        zd = jnp.zeros((dt_rank, d_inner), f32)
        Wdt = jnp.concatenate([jnp.concatenate([m1["dt_proj_w"], zd], axis=1),
                               jnp.concatenate([zd, m2["dt_proj_w"]], axis=1)], axis=0)

        slab = jnp.zeros((n_rows, width), f32)
        slab = place(slab, "bin", jnp.concatenate([m1["in_proj_b"], m2["in_proj_b"]]))
        # dir-2 taps reversed: anti-causal conv in original order == causal conv
        # of mamba2 on the flipped sequence.
        slab = place(slab, "wconv",
                     jnp.concatenate([m1["conv_w"], m2["conv_w"][::-1]], axis=1))
        slab = place(slab, "bconv",
                     jnp.concatenate([m1["conv_b"].reshape(-1),
                                      m2["conv_b"].reshape(-1)]))
        slab = place(slab, "Wdt", Wdt)
        slab = place(slab, "bdt",
                     jnp.concatenate([m1["dt_proj_b"], m2["dt_proj_b"]]))
        slab = place(slab, "A_T",
                     jnp.concatenate([-jnp.exp(m1["A_log"]).T,
                                      -jnp.exp(m2["A_log"]).T], axis=1))
        slab = place(slab, "Dv", jnp.concatenate([m1["D"], m2["D"]]))
        slab = place(slab, "bx", jnp.concatenate([m1["x_proj_b"], m2["x_proj_b"]]))
        slab = place(slab, "bout", m1["out_proj_b"] + m2["out_proj_b"])
        slab = place(slab, "n1w", lp["norm1_w"])
        slab = place(slab, "n1b", lp["norm1_b"])
        slab = place(slab, "c1b", lp["conv1_b"])
        slab = place(slab, "c2b", lp["conv2_b"])
        slab = place(slab, "n2w", lp["norm2_w"])
        slab = place(slab, "n2b", lp["norm2_b"])
        return [Win, Wx, Wout, lp["conv1_w"], lp["conv2_w"], slab]

    gslab = jnp.zeros((4, d_model), f32)
    gslab = gslab.at[0, :].set(params["lin1_b"])
    gslab = gslab.at[1, :].set(params["enc_norm_w"])
    gslab = gslab.at[2, :].set(params["enc_norm_b"])
    gslab = gslab.at[3, :P].set(params["head_b"])

    return dict(
        lin1_w=params["lin1_w"], head_w=params["head_w"], gslab=gslab,
        layers=[fuse_layer(lp) for lp in params["layers"]],
    )


# ----------------------------- pure-JAX reference (for self-check) -----------------------------

def _ref_ln(a, g, b):
    m = jnp.mean(a, axis=-1, keepdims=True)
    c = a - m
    v = jnp.mean(c * c, axis=-1, keepdims=True)
    return c / jnp.sqrt(v + 1e-5) * g + b


def _ref_mamba(x, m, cfg):
    hp = jax.lax.Precision.HIGHEST
    d_conv, d_state = cfg["dconv"], cfg["d_state"]
    dt_rank = math.ceil(cfg["d_model"] / 16)
    Bb, Ls, _ = x.shape
    xz = jnp.dot(x, m["in_proj_w"], precision=hp) + m["in_proj_b"]
    xi, z = jnp.split(xz, 2, axis=-1)
    xpad = jnp.pad(xi, ((0, 0), (d_conv - 1, 0), (0, 0)))
    acc = jnp.zeros_like(xi) + m["conv_b"]
    for k in range(d_conv):
        acc = acc + xpad[:, k:k + Ls, :] * m["conv_w"][k][None, None, :]
    xi = acc * jax.nn.sigmoid(acc)
    x_dbl = jnp.dot(xi, m["x_proj_w"], precision=hp) + m["x_proj_b"]
    dt, Bs, Cs = jnp.split(x_dbl, [dt_rank, dt_rank + d_state], axis=-1)
    dt = jax.nn.softplus(jnp.dot(dt, m["dt_proj_w"], precision=hp) + m["dt_proj_b"])
    A = -jnp.exp(m["A_log"])
    d_inner = xi.shape[-1]
    h = jnp.zeros((Bb, d_inner, d_state), jnp.float32)
    ys = []
    for t in range(Ls):
        dA = jnp.exp(dt[:, t, :, None] * A[None, :, :])
        dBu = dt[:, t, :, None] * Bs[:, t, None, :] * xi[:, t, :, None]
        h = dA * h + dBu
        yt = jnp.sum(h * Cs[:, t, None, :], axis=-1) + m["D"][None, :] * xi[:, t, :]
        zt = z[:, t, :]
        ys.append(yt * (zt * jax.nn.sigmoid(zt)))
    y = jnp.stack(ys, axis=1)
    return jnp.dot(y, m["out_proj_w"], precision=hp) + m["out_proj_b"]


def reference_forward(x, params, cfg):
    hp = jax.lax.Precision.HIGHEST
    mu = jnp.mean(x, axis=1, keepdims=True)
    xc = x - mu
    sd = jnp.sqrt(jnp.mean(xc * xc, axis=1, keepdims=True) + 1e-5)
    xn = xc / sd
    h = jnp.transpose(xn, (0, 2, 1))
    h = jnp.dot(h, params["lin1_w"], precision=hp) + params["lin1_b"]
    for lp in params["layers"]:
        new_x = _ref_mamba(h, lp["mamba1"], cfg) + jnp.flip(
            _ref_mamba(jnp.flip(h, axis=1), lp["mamba2"], cfg), axis=1)
        h = _ref_ln(h + new_x, lp["norm1_w"], lp["norm1_b"])
        ff = jnp.maximum(jnp.dot(h, lp["conv1_w"], precision=hp) + lp["conv1_b"], 0.0)
        ff = jnp.dot(ff, lp["conv2_w"], precision=hp) + lp["conv2_b"]
        h = _ref_ln(h + ff, lp["norm2_w"], lp["norm2_b"])
    h = _ref_ln(h, params["enc_norm_w"], params["enc_norm_b"])
    h = jnp.dot(h, params["head_w"], precision=hp) + params["head_b"]
    h = jnp.transpose(h, (0, 2, 1))
    return h * sd[:, 0:1, :] + mu[:, 0:1, :]


# ----------------------------- deterministic init -----------------------------

def init_params(key, cfg):
    d_model, d_state, d_conv = cfg["d_model"], cfg["d_state"], cfg["dconv"]
    d_inner = cfg["e_fact"] * d_model
    dt_rank = math.ceil(d_model / 16)
    d_ff, L, P = cfg["d_ff"], cfg["seq_len"], cfg["pred_len"]

    keys = iter(jax.random.split(key, 512))

    def w(shape, scale=None):
        s = scale if scale is not None else 1.0 / math.sqrt(shape[0])
        return jax.random.normal(next(keys), shape, jnp.float32) * s

    def zeros(shape):
        return jnp.zeros(shape, jnp.float32)

    def mamba_params():
        return dict(
            in_proj_w=w((d_model, 2 * d_inner)), in_proj_b=zeros((2 * d_inner,)),
            conv_w=w((d_conv, d_inner), 1.0 / math.sqrt(d_conv)),
            conv_b=w((d_inner,), 0.1).reshape(1, d_inner),
            x_proj_w=w((d_inner, dt_rank + 2 * d_state)),
            x_proj_b=zeros((dt_rank + 2 * d_state,)),
            dt_proj_w=w((dt_rank, d_inner)), dt_proj_b=w((d_inner,), 0.1),
            out_proj_w=w((d_inner, d_model)), out_proj_b=zeros((d_model,)),
            A_log=jnp.log(jnp.broadcast_to(
                jnp.arange(1, d_state + 1, dtype=jnp.float32), (d_inner, d_state))),
            D=jnp.ones((d_inner,), jnp.float32),
        )

    layers = []
    for _ in range(cfg["e_layers"]):
        layers.append(dict(
            mamba1=mamba_params(), mamba2=mamba_params(),
            norm1_w=jnp.ones((d_model,), jnp.float32), norm1_b=zeros((d_model,)),
            norm2_w=jnp.ones((d_model,), jnp.float32), norm2_b=zeros((d_model,)),
            conv1_w=w((d_model, d_ff)), conv1_b=w((d_ff,), 0.1),
            conv2_w=w((d_ff, d_model)), conv2_b=w((d_model,), 0.1),
        ))

    return dict(
        layers=layers,
        enc_norm_w=jnp.ones((d_model,), jnp.float32), enc_norm_b=zeros((d_model,)),
        lin1_w=w((L, d_model)), lin1_b=w((d_model,), 0.1),
        head_w=w((d_model, P)), head_b=w((P,), 0.1),
    )


# ----------------------------- main -----------------------------

if __name__ == "__main__":
    cfg = dict(enc_in=4, seq_len=8, pred_len=4, d_model=32, d_state=8,
               dconv=4, e_fact=2, d_ff=64, e_layers=1, dropout=0.0,
               activation="relu", revin=0, ch_ind=0)

    key = jax.random.PRNGKey(0)
    kx, kp = jax.random.split(key)
    x = jax.random.normal(kx, (2, cfg["seq_len"], cfg["enc_in"]), jnp.float32)
    params = init_params(kp, cfg)
    fused = prepare_fused_params(params, cfg)

    fwd = jax.jit(lambda xx, pp: model_forward(xx, pp, cfg))
    out = fwd(x, fused)
    jax.block_until_ready(out)

    assert out.shape == (2, cfg["pred_len"], cfg["enc_in"]), out.shape
    assert bool(jnp.all(jnp.isfinite(out)))

    # semantic self-check against a plain-JAX reference of the original module
    ref = jax.jit(lambda xx, pp: reference_forward(xx, pp, cfg))(x, params)
    jax.block_until_ready(ref)
    assert bool(jnp.allclose(out, ref, rtol=3e-2, atol=3e-2)), \
        float(jnp.max(jnp.abs(out - ref)))

    print("KERNEL_OK")
</pallas_src>

<mosaic_0001>
module attributes {stable_mosaic.version = 11 : i64} {
  func.func @_fused_forward_kernel(%arg0: memref<8x8xf32, #tpu.memory_space<vmem>>, %arg1: memref<8x32xf32, #tpu.memory_space<vmem>>, %arg2: memref<32x4xf32, #tpu.memory_space<vmem>>, %arg3: memref<4x32xf32, #tpu.memory_space<vmem>>, %arg4: memref<32x256xf32, #tpu.memory_space<vmem>>, %arg5: memref<128x36xf32, #tpu.memory_space<vmem>>, %arg6: memref<128x32xf32, #tpu.memory_space<vmem>>, %arg7: memref<32x64xf32, #tpu.memory_space<vmem>>, %arg8: memref<64x32xf32, #tpu.memory_space<vmem>>, %arg9: memref<28x256xf32, #tpu.memory_space<vmem>>, %arg10: memref<8x4xf32, #tpu.memory_space<vmem>>) attributes {dimension_semantics = [], scalar_prefetch = 0 : i64, scratch_operands = 0 : i64, tpu.core_type = #tpu.core_type<tc>} {
    %c0 = arith.constant 0 : index
    %c0_0 = arith.constant 0 : index
    %0 = vector.load %arg3[%c0, %c0_0] : memref<4x32xf32, #tpu.memory_space<vmem>>, vector<4x32xf32>
    %1 = vector.extract_strided_slice %0 {offsets = [0, 0], sizes = [1, 32], strides = [1, 1]} : vector<4x32xf32> to vector<1x32xf32>
    %2 = vector.extract_strided_slice %0 {offsets = [1, 0], sizes = [1, 32], strides = [1, 1]} : vector<4x32xf32> to vector<1x32xf32>
    %3 = vector.extract_strided_slice %0 {offsets = [2, 0], sizes = [1, 32], strides = [1, 1]} : vector<4x32xf32> to vector<1x32xf32>
    %4 = vector.extract_strided_slice %0 {offsets = [3, 0], sizes = [1, 4], strides = [1, 1]} : vector<4x32xf32> to vector<1x4xf32>
    %c0_1 = arith.constant 0 : index
    %c0_2 = arith.constant 0 : index
    %5 = vector.load %arg0[%c0_1, %c0_2] : memref<8x8xf32, #tpu.memory_space<vmem>>, vector<8x8xf32>
    %cst = arith.constant dense<0.000000e+00> : vector<8xf32>
    %6 = vector.multi_reduction <add>, %5, %cst [1] : vector<8x8xf32> to vector<8xf32>
    %7 = vector.shape_cast %6 : vector<8xf32> to vector<8x1xf32>
    %cst_3 = arith.constant 8.000000e+00 : f32
    %8 = vector.broadcast %cst_3 : f32 to vector<8x1xf32>
    %9 = arith.divf %7, %8 : vector<8x1xf32>
    %10 = vector.broadcast %9 : vector<8x1xf32> to vector<8x8xf32>
    %11 = arith.subf %5, %10 : vector<8x8xf32>
    %12 = arith.mulf %11, %11 : vector<8x8xf32>
    %cst_4 = arith.constant dense<0.000000e+00> : vector<8xf32>
    %13 = vector.multi_reduction <add>, %12, %cst_4 [1] : vector<8x8xf32> to vector<8xf32>
    %14 = vector.shape_cast %13 : vector<8xf32> to vector<8x1xf32>
    %cst_5 = arith.constant 8.000000e+00 : f32
    %15 = vector.broadcast %cst_5 : f32 to vector<8x1xf32>
    %16 = arith.divf %14, %15 : vector<8x1xf32>
    %cst_6 = arith.constant 9.99999974E-6 : f32
    %17 = vector.broadcast %cst_6 : f32 to vector<8x1xf32>
    %18 = arith.addf %16, %17 : vector<8x1xf32>
    %19 = math.sqrt %18 : vector<8x1xf32>
    %20 = vector.broadcast %19 : vector<8x1xf32> to vector<8x8xf32>
    %21 = arith.divf %11, %20 : vector<8x8xf32>
    %c0_7 = arith.constant 0 : index
    %c0_8 = arith.constant 0 : index
    %22 = vector.load %arg1[%c0_7, %c0_8] : memref<8x32xf32, #tpu.memory_space<vmem>>, vector<8x32xf32>
    %cst_9 = arith.constant dense<0.000000e+00> : vector<8x32xf32>
    %23 = tpu.matmul %21, %22, %cst_9 {dimension_numbers = #tpu.dot_dimension_numbers<[1], [0], [0], [1], [0, 0, 1, 1], [], []>} : vector<8x8xf32>, vector<8x32xf32>, vector<8x32xf32> -> vector<8x32xf32>
    %24 = vector.broadcast %1 : vector<1x32xf32> to vector<8x32xf32>
    %25 = arith.addf %23, %24 : vector<8x32xf32>
    %c0_10 = arith.constant 0 : index
    %c0_11 = arith.constant 0 : index
    %26 = vector.load %arg9[%c0_10, %c0_11] : memref<28x256xf32, #tpu.memory_space<vmem>>, vector<28x256xf32>
    %c0_12 = arith.constant 0 : index
    %c0_13 = arith.constant 0 : index
    %27 = vector.load %arg4[%c0_12, %c0_13] : memref<32x256xf32, #tpu.memory_space<vmem>>, vector<32x256xf32>
    %28 = vector.extract_strided_slice %26 {offsets = [0, 0], sizes = [1, 256], strides = [1, 1]} : vector<28x256xf32> to vector<1x256xf32>
    %cst_14 = arith.constant dense<0.000000e+00> : vector<8x256xf32>
    %29 = tpu.matmul %25, %27, %cst_14 {dimension_numbers = #tpu.dot_dimension_numbers<[1], [0], [0], [1], [0, 0, 1, 1], [], []>} : vector<8x32xf32>, vector<32x256xf32>, vector<8x256xf32> -> vector<8x256xf32>
    %30 = vector.broadcast %28 : vector<1x256xf32> to vector<8x256xf32>
    %31 = arith.addf %29, %30 : vector<8x256xf32>
    %32 = vector.extract_strided_slice %31 {offsets = [0, 0], sizes = [8, 64], strides = [1, 1]} : vector<8x256xf32> to vector<8x64xf32>
    %33 = vector.extract_strided_slice %31 {offsets = [0, 128], sizes = [8, 64], strides = [1, 1]} : vector<8x256xf32> to vector<8x64xf32>
    %34 = vector.extract_strided_slice %31 {offsets = [0, 64], sizes = [8, 64], strides = [1, 1]} : vector<8x256xf32> to vector<8x64xf32>
    %35 = vector.extract_strided_slice %31 {offsets = [0, 192], sizes = [8, 64], strides = [1, 1]} : vector<8x256xf32> to vector<8x64xf32>
    %36 = tpu.concatenate %34, %35 in 1 : vector<8x64xf32>, vector<8x64xf32> -> vector<8x128xf32>
    %cst_15 = arith.constant 0.000000e+00 : f32
    %37 = vector.broadcast %cst_15 : f32 to vector<6x64xf32>
    %38 = tpu.concatenate %37, %32 in 0 : vector<6x64xf32>, vector<8x64xf32> -> vector<14x64xf32>
    %39 = tpu.concatenate %33, %37 in 0 : vector<8x64xf32>, vector<6x64xf32> -> vector<14x64xf32>
    %40 = tpu.concatenate %38, %39 in 1 : vector<14x64xf32>, vector<14x64xf32> -> vector<14x128xf32>
    %41 = vector.extract_strided_slice %26 {offsets = [1, 0], sizes = [4, 128], strides = [1, 1]} : vector<28x256xf32> to vector<4x128xf32>
    %cst_16 = arith.constant 0.000000e+00 : f32
    %42 = vector.broadcast %cst_16 : f32 to vector<8x128xf32>
    %43 = vector.extract_strided_slice %26 {offsets = [5, 0], sizes = [1, 128], strides = [1, 1]} : vector<28x256xf32> to vector<1x128xf32>
    %44 = vector.broadcast %43 : vector<1x128xf32> to vector<8x128xf32>
    %45 = arith.addf %42, %44 : vector<8x128xf32>
    %46 = vector.extract_strided_slice %40 {offsets = [0, 0], sizes = [8, 128], strides = [1, 1]} : vector<14x128xf32> to vector<8x128xf32>
    %47 = vector.extract_strided_slice %41 {offsets = [0, 0], sizes = [1, 128], strides = [1, 1]} : vector<4x128xf32> to vector<1x128xf32>
    %48 = vector.broadcast %47 : vector<1x128xf32> to vector<8x128xf32>
    %49 = arith.mulf %46, %48 : vector<8x128xf32>
    %50 = arith.addf %45, %49 : vector<8x128xf32>
    %51 = vector.extract_strided_slice %40 {offsets = [2, 0], sizes = [8, 128], strides = [1, 1]} : vector<14x128xf32> to vector<8x128xf32>
    %52 = vector.extract_strided_slice %41 {offsets = [1, 0], sizes = [1, 128], strides = [1, 1]} : vector<4x128xf32> to vector<1x128xf32>
    %53 = vector.broadcast %52 : vector<1x128xf32> to vector<8x128xf32>
    %54 = arith.mulf %51, %53 : vector<8x128xf32>
    %55 = arith.addf %50, %54 : vector<8x128xf32>
    %56 = vector.extract_strided_slice %40 {offsets = [4, 0], sizes = [8, 128], strides = [1, 1]} : vector<14x128xf32> to vector<8x128xf32>
    %57 = vector.extract_strided_slice %41 {offsets = [2, 0], sizes = [1, 128], strides = [1, 1]} : vector<4x128xf32> to vector<1x128xf32>
    %58 = vector.broadcast %57 : vector<1x128xf32> to vector<8x128xf32>
    %59 = arith.mulf %56, %58 : vector<8x128xf32>
    %60 = arith.addf %55, %59 : vector<8x128xf32>
    %61 = vector.extract_strided_slice %40 {offsets = [6, 0], sizes = [8, 128], strides = [1, 1]} : vector<14x128xf32> to vector<8x128xf32>
    %62 = vector.extract_strided_slice %41 {offsets = [3, 0], sizes = [1, 128], strides = [1, 1]} : vector<4x128xf32> to vector<1x128xf32>
    %63 = vector.broadcast %62 : vector<1x128xf32> to vector<8x128xf32>
    %64 = arith.mulf %61, %63 : vector<8x128xf32>
    %65 = arith.addf %60, %64 : vector<8x128xf32>
    %66 = arith.negf %65 : vector<8x128xf32>
    %67 = math.exp %66 : vector<8x128xf32>
    %cst_17 = arith.constant 1.000000e+00 : f32
    %68 = vector.broadcast %cst_17 : f32 to vector<8x128xf32>
    %69 = arith.addf %68, %67 : vector<8x128xf32>
    %70 = arith.divf %68, %69 : vector<8x128xf32>
    %71 = arith.mulf %65, %70 : vector<8x128xf32>
    %c0_18 = arith.constant 0 : index
    %c0_19 = arith.constant 0 : index
    %72 = vector.load %arg5[%c0_18, %c0_19] : memref<128x36xf32, #tpu.memory_space<vmem>>, vector<128x36xf32>
    %73 = vector.extract_strided_slice %26 {offsets = [20, 0], sizes = [1, 36], strides = [1, 1]} : vector<28x256xf32> to vector<1x36xf32>
    %cst_20 = arith.constant dense<0.000000e+00> : vector<8x36xf32>
    %74 = tpu.matmul %71, %72, %cst_20 {dimension_numbers = #tpu.dot_dimension_numbers<[1], [0], [0], [1], [0, 0, 1, 1], [], []>} : vector<8x128xf32>, vector<128x36xf32>, vector<8x36xf32> -> vector<8x36xf32>
    %75 = vector.broadcast %73 : vector<1x36xf32> to vector<8x36xf32>
    %76 = arith.addf %74, %75 : vector<8x36xf32>
    %77 = vector.extract_strided_slice %76 {offsets = [0, 0], sizes = [8, 2], strides = [1, 1]} : vector<8x36xf32> to vector<8x2xf32>
    %78 = vector.extract_strided_slice %76 {offsets = [0, 18], sizes = [8, 2], strides = [1, 1]} : vector<8x36xf32> to vector<8x2xf32>
    %79 = tpu.concatenate %77, %78 in 1 : vector<8x2xf32>, vector<8x2xf32> -> vector<8x4xf32>
    %80 = vector.extract_strided_slice %26 {offsets = [6, 0], sizes = [4, 128], strides = [1, 1]} : vector<28x256xf32> to vector<4x128xf32>
    %81 = vector.extract_strided_slice %26 {offsets = [10, 0], sizes = [1, 128], strides = [1, 1]} : vector<28x256xf32> to vector<1x128xf32>
    %cst_21 = arith.constant dense<0.000000e+00> : vector<8x128xf32>
    %82 = tpu.matmul %79, %80, %cst_21 {dimension_numbers = #tpu.dot_dimension_numbers<[1], [0], [0], [1], [0, 0, 1, 1], [], []>} : vector<8x4xf32>, vector<4x128xf32>, vector<8x128xf32> -> vector<8x128xf32>
    %83 = vector.broadcast %81 : vector<1x128xf32> to vector<8x128xf32>
    %84 = arith.addf %82, %83 : vector<8x128xf32>
    %cst_22 = arith.constant 0.000000e+00 : f32
    %85 = vector.broadcast %cst_22 : f32 to vector<8x128xf32>
    %86 = arith.maximumf %84, %85 : vector<8x128xf32>
    %87 = math.absf %84 : vector<8x128xf32>
    %cst_23 = arith.constant 0.000000e+00 : f32
    %88 = vector.broadcast %cst_23 : f32 to vector<8x128xf32>
    %89 = arith.subf %88, %87 : vector<8x128xf32>
    %90 = math.exp %89 : vector<8x128xf32>
    %cst_24 = arith.constant 1.000000e+00 : f32
    %91 = vector.broadcast %cst_24 : f32 to vector<8x128xf32>
    %92 = arith.addf %91, %90 : vector<8x128xf32>
    %93 = math.log %92 : vector<8x128xf32>
    %94 = arith.addf %86, %93 : vector<8x128xf32>
    %95 = vector.extract_strided_slice %76 {offsets = [0, 2], sizes = [8, 8], strides = [1, 1]} : vector<8x36xf32> to vector<8x8xf32>
    %96 = vector.extract_strided_slice %76 {offsets = [0, 10], sizes = [8, 8], strides = [1, 1]} : vector<8x36xf32> to vector<8x8xf32>
    %97 = vector.extract_strided_slice %76 {offsets = [0, 20], sizes = [8, 8], strides = [1, 1]} : vector<8x36xf32> to vector<8x8xf32>
    %98 = vector.extract_strided_slice %76 {offsets = [0, 28], sizes = [8, 8], strides = [1, 1]} : vector<8x36xf32> to vector<8x8xf32>
    %99 = vector.extract_strided_slice %26 {offsets = [11, 0], sizes = [8, 128], strides = [1, 1]} : vector<28x256xf32> to vector<8x128xf32>
    %100 = vector.extract_strided_slice %26 {offsets = [19, 0], sizes = [1, 128], strides = [1, 1]} : vector<28x256xf32> to vector<1x128xf32>
    %101 = vector.extract_strided_slice %94 {offsets = [0, 0], sizes = [8, 64], strides = [1, 1]} : vector<8x128xf32> to vector<8x64xf32>
    %102 = vector.extract_strided_slice %94 {offsets = [0, 64], sizes = [8, 64], strides = [1, 1]} : vector<8x128xf32> to vector<8x64xf32>
    %103 = vector.extract_strided_slice %102 {offsets = [6, 0], sizes = [2, 64], strides = [1, 1]} : vector<8x64xf32> to vector<2x64xf32>
    %104 = vector.extract_strided_slice %102 {offsets = [4, 0], sizes = [2, 64], strides = [1, 1]} : vector<8x64xf32> to vector<2x64xf32>
    %105 = vector.extract_strided_slice %102 {offsets = [2, 0], sizes = [2, 64], strides = [1, 1]} : vector<8x64xf32> to vector<2x64xf32>
    %106 = vector.extract_strided_slice %102 {offsets = [0, 0], sizes = [2, 64], strides = [1, 1]} : vector<8x64xf32> to vector<2x64xf32>
    %107 = tpu.concatenate %103, %104, %105, %106 in 0 : vector<2x64xf32>, vector<2x64xf32>, vector<2x64xf32>, vector<2x64xf32> -> vector<8x64xf32>
    %108 = tpu.concatenate %101, %107 in 1 : vector<8x64xf32>, vector<8x64xf32> -> vector<8x128xf32>
    %109 = vector.extract_strided_slice %71 {offsets = [0, 0], sizes = [8, 64], strides = [1, 1]} : vector<8x128xf32> to vector<8x64xf32>
    %110 = vector.extract_strided_slice %71 {offsets = [0, 64], sizes = [8, 64], strides = [1, 1]} : vector<8x128xf32> to vector<8x64xf32>
    %111 = vector.extract_strided_slice %110 {offsets = [6, 0], sizes = [2, 64], strides = [1, 1]} : vector<8x64xf32> to vector<2x64xf32>
    %112 = vector.extract_strided_slice %110 {offsets = [4, 0], sizes = [2, 64], strides = [1, 1]} : vector<8x64xf32> to vector<2x64xf32>
    %113 = vector.extract_strided_slice %110 {offsets = [2, 0], sizes = [2, 64], strides = [1, 1]} : vector<8x64xf32> to vector<2x64xf32>
    %114 = vector.extract_strided_slice %110 {offsets = [0, 0], sizes = [2, 64], strides = [1, 1]} : vector<8x64xf32> to vector<2x64xf32>
    %115 = tpu.concatenate %111, %112, %113, %114 in 0 : vector<2x64xf32>, vector<2x64xf32>, vector<2x64xf32>, vector<2x64xf32> -> vector<8x64xf32>
    %116 = tpu.concatenate %109, %115 in 1 : vector<8x64xf32>, vector<8x64xf32> -> vector<8x128xf32>
    %117 = vector.extract_strided_slice %97 {offsets = [6, 0], sizes = [2, 8], strides = [1, 1]} : vector<8x8xf32> to vector<2x8xf32>
    %118 = vector.extract_strided_slice %97 {offsets = [4, 0], sizes = [2, 8], strides = [1, 1]} : vector<8x8xf32> to vector<2x8xf32>
    %119 = vector.extract_strided_slice %97 {offsets = [2, 0], sizes = [2, 8], strides = [1, 1]} : vector<8x8xf32> to vector<2x8xf32>
    %120 = vector.extract_strided_slice %97 {offsets = [0, 0], sizes = [2, 8], strides = [1, 1]} : vector<8x8xf32> to vector<2x8xf32>
    %121 = tpu.concatenate %117, %118, %119, %120 in 0 : vector<2x8xf32>, vector<2x8xf32>, vector<2x8xf32>, vector<2x8xf32> -> vector<8x8xf32>
    %122 = tpu.concatenate %95, %121 in 1 : vector<8x8xf32>, vector<8x8xf32> -> vector<8x16xf32>
    %123 = vector.extract_strided_slice %98 {offsets = [6, 0], sizes = [2, 8], strides = [1, 1]} : vector<8x8xf32> to vector<2x8xf32>
    %124 = vector.extract_strided_slice %98 {offsets = [4, 0], sizes = [2, 8], strides = [1, 1]} : vector<8x8xf32> to vector<2x8xf32>
    %125 = vector.extract_strided_slice %98 {offsets = [2, 0], sizes = [2, 8], strides = [1, 1]} : vector<8x8xf32> to vector<2x8xf32>
    %126 = vector.extract_strided_slice %98 {offsets = [0, 0], sizes = [2, 8], strides = [1, 1]} : vector<8x8xf32> to vector<2x8xf32>
    %127 = tpu.concatenate %123, %124, %125, %126 in 0 : vector<2x8xf32>, vector<2x8xf32>, vector<2x8xf32>, vector<2x8xf32> -> vector<8x8xf32>
    %128 = tpu.concatenate %96, %127 in 1 : vector<8x8xf32>, vector<8x8xf32> -> vector<8x16xf32>
    %129 = arith.mulf %108, %116 : vector<8x128xf32>
    %130 = vector.extract_strided_slice %99 {offsets = [0, 0], sizes = [1, 128], strides = [1, 1]} : vector<8x128xf32> to vector<1x128xf32>
    %131 = vector.broadcast %130 : vector<1x128xf32> to vector<8x128xf32>
    %132 = arith.mulf %108, %131 : vector<8x128xf32>
    %133 = math.exp %132 : vector<8x128xf32>
    %134 = vector.extract_strided_slice %99 {offsets = [1, 0], sizes = [1, 128], strides = [1, 1]} : vector<8x128xf32> to vector<1x128xf32>
    %135 = vector.broadcast %134 : vector<1x128xf32> to vector<8x128xf32>
    %136 = arith.mulf %108, %135 : vector<8x128xf32>
    %137 = math.exp %136 : vector<8x128xf32>
    %138 = vector.extract_strided_slice %99 {offsets = [2, 0], sizes = [1, 128], strides = [1, 1]} : vector<8x128xf32> to vector<1x128xf32>
    %139 = vector.broadcast %138 : vector<1x128xf32> to vector<8x128xf32>
    %140 = arith.mulf %108, %139 : vector<8x128xf32>
    %141 = math.exp %140 : vector<8x128xf32>
    %142 = vector.extract_strided_slice %99 {offsets = [3, 0], sizes = [1, 128], strides = [1, 1]} : vector<8x128xf32> to vector<1x128xf32>
    %143 = vector.broadcast %142 : vector<1x128xf32> to vector<8x128xf32>
    %144 = arith.mulf %108, %143 : vector<8x128xf32>
    %145 = math.exp %144 : vector<8x128xf32>
    %146 = vector.extract_strided_slice %99 {offsets = [4, 0], sizes = [1, 128], strides = [1, 1]} : vector<8x128xf32> to vector<1x128xf32>
    %147 = vector.broadcast %146 : vector<1x128xf32> to vector<8x128xf32>
    %148 = arith.mulf %108, %147 : vector<8x128xf32>
    %149 = math.exp %148 : vector<8x128xf32>
    %150 = vector.extract_strided_slice %99 {offsets = [5, 0], sizes = [1, 128], strides = [1, 1]} : vector<8x128xf32> to vector<1x128xf32>
    %151 = vector.broadcast %150 : vector<1x128xf32> to vector<8x128xf32>
    %152 = arith.mulf %108, %151 : vector<8x128xf32>
    %153 = math.exp %152 : vector<8x128xf32>
    %154 = vector.extract_strided_slice %99 {offsets = [6, 0], sizes = [1, 128], strides = [1, 1]} : vector<8x128xf32> to vector<1x128xf32>
    %155 = vector.broadcast %154 : vector<1x128xf32> to vector<8x128xf32>
    %156 = arith.mulf %108, %155 : vector<8x128xf32>
    %157 = math.exp %156 : vector<8x128xf32>
    %158 = vector.extract_strided_slice %99 {offsets = [7, 0], sizes = [1, 128], strides = [1, 1]} : vector<8x128xf32> to vector<1x128xf32>
    %159 = vector.broadcast %158 : vector<1x128xf32> to vector<8x128xf32>
    %160 = arith.mulf %108, %159 : vector<8x128xf32>
    %161 = math.exp %160 : vector<8x128xf32>
    %162 = vector.extract_strided_slice %122 {offsets = [0, 0], sizes = [8, 1], strides = [1, 1]} : vector<8x16xf32> to vector<8x1xf32>
    %163 = vector.shape_cast %162 : vector<8x1xf32> to vector<8x1xf32>
    %164 = vector.broadcast %163 : vector<8x1xf32> to vector<8x64xf32>
    %165 = vector.extract_strided_slice %122 {offsets = [0, 8], sizes = [8, 1], strides = [1, 1]} : vector<8x16xf32> to vector<8x1xf32>
    %166 = vector.shape_cast %165 : vector<8x1xf32> to vector<8x1xf32>
    %167 = vector.broadcast %166 : vector<8x1xf32> to vector<8x64xf32>
    %168 = tpu.concatenate %164, %167 in 1 : vector<8x64xf32>, vector<8x64xf32> -> vector<8x128xf32>
    %169 = arith.mulf %129, %168 : vector<8x128xf32>
    %170 = vector.extract_strided_slice %122 {offsets = [0, 1], sizes = [8, 1], strides = [1, 1]} : vector<8x16xf32> to vector<8x1xf32>
    %171 = vector.shape_cast %170 : vector<8x1xf32> to vector<8x1xf32>
    %172 = vector.broadcast %171 : vector<8x1xf32> to vector<8x64xf32>
    %173 = vector.extract_strided_slice %122 {offsets = [0, 9], sizes = [8, 1], strides = [1, 1]} : vector<8x16xf32> to vector<8x1xf32>
    %174 = vector.shape_cast %173 : vector<8x1xf32> to vector<8x1xf32>
    %175 = vector.broadcast %174 : vector<8x1xf32> to vector<8x64xf32>
    %176 = tpu.concatenate %172, %175 in 1 : vector<8x64xf32>, vector<8x64xf32> -> vector<8x128xf32>
    %177 = arith.mulf %129, %176 : vector<8x128xf32>
    %178 = vector.extract_strided_slice %122 {offsets = [0, 2], sizes = [8, 1], strides = [1, 1]} : vector<8x16xf32> to vector<8x1xf32>
    %179 = vector.shape_cast %178 : vector<8x1xf32> to vector<8x1xf32>
    %180 = vector.broadcast %179 : vector<8x1xf32> to vector<8x64xf32>
    %181 = vector.extract_strided_slice %122 {offsets = [0, 10], sizes = [8, 1], strides = [1, 1]} : vector<8x16xf32> to vector<8x1xf32>
    %182 = vector.shape_cast %181 : vector<8x1xf32> to vector<8x1xf32>
    %183 = vector.broadcast %182 : vector<8x1xf32> to vector<8x64xf32>
    %184 = tpu.concatenate %180, %183 in 1 : vector<8x64xf32>, vector<8x64xf32> -> vector<8x128xf32>
    %185 = arith.mulf %129, %184 : vector<8x128xf32>
    %186 = vector.extract_strided_slice %122 {offsets = [0, 3], sizes = [8, 1], strides = [1, 1]} : vector<8x16xf32> to vector<8x1xf32>
    %187 = vector.shape_cast %186 : vector<8x1xf32> to vector<8x1xf32>
    %188 = vector.broadcast %187 : vector<8x1xf32> to vector<8x64xf32>
    %189 = vector.extract_strided_slice %122 {offsets = [0, 11], sizes = [8, 1], strides = [1, 1]} : vector<8x16xf32> to vector<8x1xf32>
    %190 = vector.shape_cast %189 : vector<8x1xf32> to vector<8x1xf32>
    %191 = vector.broadcast %190 : vector<8x1xf32> to vector<8x64xf32>
    %192 = tpu.concatenate %188, %191 in 1 : vector<8x64xf32>, vector<8x64xf32> -> vector<8x128xf32>
    %193 = arith.mulf %129, %192 : vector<8x128xf32>
    %194 = vector.extract_strided_slice %122 {offsets = [0, 4], sizes = [8, 1], strides = [1, 1]} : vector<8x16xf32> to vector<8x1xf32>
    %195 = vector.shape_cast %194 : vector<8x1xf32> to vector<8x1xf32>
    %196 = vector.broadcast %195 : vector<8x1xf32> to vector<8x64xf32>
    %197 = vector.extract_strided_slice %122 {offsets = [0, 12], sizes = [8, 1], strides = [1, 1]} : vector<8x16xf32> to vector<8x1xf32>
    %198 = vector.shape_cast %197 : vector<8x1xf32> to vector<8x1xf32>
    %199 = vector.broadcast %198 : vector<8x1xf32> to vector<8x64xf32>
    %200 = tpu.concatenate %196, %199 in 1 : vector<8x64xf32>, vector<8x64xf32> -> vector<8x128xf32>
    %201 = arith.mulf %129, %200 : vector<8x128xf32>
    %202 = vector.extract_strided_slice %122 {offsets = [0, 5], sizes = [8, 1], strides = [1, 1]} : vector<8x16xf32> to vector<8x1xf32>
    %203 = vector.shape_cast %202 : vector<8x1xf32> to vector<8x1xf32>
    %204 = vector.broadcast %203 : vector<8x1xf32> to vector<8x64xf32>
    %205 = vector.extract_strided_slice %122 {offsets = [0, 13], sizes = [8, 1], strides = [1, 1]} : vector<8x16xf32> to vector<8x1xf32>
    %206 = vector.shape_cast %205 : vector<8x1xf32> to vector<8x1xf32>
    %207 = vector.broadcast %206 : vector<8x1xf32> to vector<8x64xf32>
    %208 = tpu.concatenate %204, %207 in 1 : vector<8x64xf32>, vector<8x64xf32> -> vector<8x128xf32>
    %209 = arith.mulf %129, %208 : vector<8x128xf32>
    %210 = vector.extract_strided_slice %122 {offsets = [0, 6], sizes = [8, 1], strides = [1, 1]} : vector<8x16xf32> to vector<8x1xf32>
    %211 = vector.shape_cast %210 : vector<8x1xf32> to vector<8x1xf32>
    %212 = vector.broadcast %211 : vector<8x1xf32> to vector<8x64xf32>
    %213 = vector.extract_strided_slice %122 {offsets = [0, 14], sizes = [8, 1], strides = [1, 1]} : vector<8x16xf32> to vector<8x1xf32>
    %214 = vector.shape_cast %213 : vector<8x1xf32> to vector<8x1xf32>
    %215 = vector.broadcast %214 : vector<8x1xf32> to vector<8x64xf32>
    %216 = tpu.concatenate %212, %215 in 1 : vector<8x64xf32>, vector<8x64xf32> -> vector<8x128xf32>
    %217 = arith.mulf %129, %216 : vector<8x128xf32>
    %218 = vector.extract_strided_slice %122 {offsets = [0, 7], sizes = [8, 1], strides = [1, 1]} : vector<8x16xf32> to vector<8x1xf32>
    %219 = vector.shape_cast %218 : vector<8x1xf32> to vector<8x1xf32>
    %220 = vector.broadcast %219 : vector<8x1xf32> to vector<8x64xf32>
    %221 = vector.extract_strided_slice %122 {offsets = [0, 15], sizes = [8, 1], strides = [1, 1]} : vector<8x16xf32> to vector<8x1xf32>
    %222 = vector.shape_cast %221 : vector<8x1xf32> to vector<8x1xf32>
    %223 = vector.broadcast %222 : vector<8x1xf32> to vector<8x64xf32>
    %224 = tpu.concatenate %220, %223 in 1 : vector<8x64xf32>, vector<8x64xf32> -> vector<8x128xf32>
    %225 = arith.mulf %129, %224 : vector<8x128xf32>
    %226 = vector.extract_strided_slice %128 {offsets = [0, 0], sizes = [8, 1], strides = [1, 1]} : vector<8x16xf32> to vector<8x1xf32>
    %227 = vector.shape_cast %226 : vector<8x1xf32> to vector<8x1xf32>
    %228 = vector.broadcast %227 : vector<8x1xf32> to vector<8x64xf32>
    %229 = vector.extract_strided_slice %128 {offsets = [0, 8], sizes = [8, 1], strides = [1, 1]} : vector<8x16xf32> to vector<8x1xf32>
    %230 = vector.shape_cast %229 : vector<8x1xf32> to vector<8x1xf32>
    %231 = vector.broadcast %230 : vector<8x1xf32> to vector<8x64xf32>
    %232 = tpu.concatenate %228, %231 in 1 : vector<8x64xf32>, vector<8x64xf32> -> vector<8x128xf32>
    %233 = vector.extract_strided_slice %128 {offsets = [0, 1], sizes = [8, 1], strides = [1, 1]} : vector<8x16xf32> to vector<8x1xf32>
    %234 = vector.shape_cast %233 : vector<8x1xf32> to vector<8x1xf32>
    %235 = vector.broadcast %234 : vector<8x1xf32> to vector<8x64xf32>
    %236 = vector.extract_strided_slice %128 {offsets = [0, 9], sizes = [8, 1], strides = [1, 1]} : vector<8x16xf32> to vector<8x1xf32>
    %237 = vector.shape_cast %236 : vector<8x1xf32> to vector<8x1xf32>
    %238 = vector.broadcast %237 : vector<8x1xf32> to vector<8x64xf32>
    %239 = tpu.concatenate %235, %238 in 1 : vector<8x64xf32>, vector<8x64xf32> -> vector<8x128xf32>
    %240 = vector.extract_strided_slice %128 {offsets = [0, 2], sizes = [8, 1], strides = [1, 1]} : vector<8x16xf32> to vector<8x1xf32>
    %241 = vector.shape_cast %240 : vector<8x1xf32> to vector<8x1xf32>
    %242 = vector.broadcast %241 : vector<8x1xf32> to vector<8x64xf32>
    %243 = vector.extract_strided_slice %128 {offsets = [0, 10], sizes = [8, 1], strides = [1, 1]} : vector<8x16xf32> to vector<8x1xf32>
    %244 = vector.shape_cast %243 : vector<8x1xf32> to vector<8x1xf32>
    %245 = vector.broadcast %244 : vector<8x1xf32> to vector<8x64xf32>
    %246 = tpu.concatenate %242, %245 in 1 : vector<8x64xf32>, vector<8x64xf32> -> vector<8x128xf32>
    %247 = vector.extract_strided_slice %128 {offsets = [0, 3], sizes = [8, 1], strides = [1, 1]} : vector<8x16xf32> to vector<8x1xf32>
    %248 = vector.shape_cast %247 : vector<8x1xf32> to vector<8x1xf32>
    %249 = vector.broadcast %248 : vector<8x1xf32> to vector<8x64xf32>
    %250 = vector.extract_strided_slice %128 {offsets = [0, 11], sizes = [8, 1], strides = [1, 1]} : vector<8x16xf32> to vector<8x1xf32>
    %251 = vector.shape_cast %250 : vector<8x1xf32> to vector<8x1xf32>
    %252 = vector.broadcast %251 : vector<8x1xf32> to vector<8x64xf32>
    %253 = tpu.concatenate %249, %252 in 1 : vector<8x64xf32>, vector<8x64xf32> -> vector<8x128xf32>
    %254 = vector.extract_strided_slice %128 {offsets = [0, 4], sizes = [8, 1], strides = [1, 1]} : vector<8x16xf32> to vector<8x1xf32>
    %255 = vector.shape_cast %254 : vector<8x1xf32> to vector<8x1xf32>
    %256 = vector.broadcast %255 : vector<8x1xf32> to vector<8x64xf32>
    %257 = vector.extract_strided_slice %128 {offsets = [0, 12], sizes = [8, 1], strides = [1, 1]} : vector<8x16xf32> to vector<8x1xf32>
    %258 = vector.shape_cast %257 : vector<8x1xf32> to vector<8x1xf32>
    %259 = vector.broadcast %258 : vector<8x1xf32> to vector<8x64xf32>
    %260 = tpu.concatenate %256, %259 in 1 : vector<8x64xf32>, vector<8x64xf32> -> vector<8x128xf32>
    %261 = vector.extract_strided_slice %128 {offsets = [0, 5], sizes = [8, 1], strides = [1, 1]} : vector<8x16xf32> to vector<8x1xf32>
    %262 = vector.shape_cast %261 : vector<8x1xf32> to vector<8x1xf32>
    %263 = vector.broadcast %262 : vector<8x1xf32> to vector<8x64xf32>
    %264 = vector.extract_strided_slice %128 {offsets = [0, 13], sizes = [8, 1], strides = [1, 1]} : vector<8x16xf32> to vector<8x1xf32>
    %265 = vector.shape_cast %264 : vector<8x1xf32> to vector<8x1xf32>
    %266 = vector.broadcast %265 : vector<8x1xf32> to vector<8x64xf32>
    %267 = tpu.concatenate %263, %266 in 1 : vector<8x64xf32>, vector<8x64xf32> -> vector<8x128xf32>
    %268 = vector.extract_strided_slice %128 {offsets = [0, 6], sizes = [8, 1], strides = [1, 1]} : vector<8x16xf32> to vector<8x1xf32>
    %269 = vector.shape_cast %268 : vector<8x1xf32> to vector<8x1xf32>
    %270 = vector.broadcast %269 : vector<8x1xf32> to vector<8x64xf32>
    %271 = vector.extract_strided_slice %128 {offsets = [0, 14], sizes = [8, 1], strides = [1, 1]} : vector<8x16xf32> to vector<8x1xf32>
    %272 = vector.shape_cast %271 : vector<8x1xf32> to vector<8x1xf32>
    %273 = vector.broadcast %272 : vector<8x1xf32> to vector<8x64xf32>
    %274 = tpu.concatenate %270, %273 in 1 : vector<8x64xf32>, vector<8x64xf32> -> vector<8x128xf32>
    %275 = vector.extract_strided_slice %128 {offsets = [0, 7], sizes = [8, 1], strides = [1, 1]} : vector<8x16xf32> to vector<8x1xf32>
    %276 = vector.shape_cast %275 : vector<8x1xf32> to vector<8x1xf32>
    %277 = vector.broadcast %276 : vector<8x1xf32> to vector<8x64xf32>
    %278 = vector.extract_strided_slice %128 {offsets = [0, 15], sizes = [8, 1], strides = [1, 1]} : vector<8x16xf32> to vector<8x1xf32>
    %279 = vector.shape_cast %278 : vector<8x1xf32> to vector<8x1xf32>
    %280 = vector.broadcast %279 : vector<8x1xf32> to vector<8x64xf32>
    %281 = tpu.concatenate %277, %280 in 1 : vector<8x64xf32>, vector<8x64xf32> -> vector<8x128xf32>
    %cst_25 = arith.constant 0.000000e+00 : f32
    %282 = vector.broadcast %cst_25 : f32 to vector<2x128xf32>
    %cst_26 = arith.constant 0.000000e+00 : f32
    %283 = vector.broadcast %cst_26 : f32 to vector<2x128xf32>
    %cst_27 = arith.constant 0.000000e+00 : f32
    %284 = vector.broadcast %cst_27 : f32 to vector<2x128xf32>
    %cst_28 = arith.constant 0.000000e+00 : f32
    %285 = vector.broadcast %cst_28 : f32 to vector<2x128xf32>
    %cst_29 = arith.constant 0.000000e+00 : f32
    %286 = vector.broadcast %cst_29 : f32 to vector<2x128xf32>
    %cst_30 = arith.constant 0.000000e+00 : f32
    %287 = vector.broadcast %cst_30 : f32 to vector<2x128xf32>
    %cst_31 = arith.constant 0.000000e+00 : f32
    %288 = vector.broadcast %cst_31 : f32 to vector<2x128xf32>
    %cst_32 = arith.constant 0.000000e+00 : f32
    %289 = vector.broadcast %cst_32 : f32 to vector<2x128xf32>
    %290 = vector.extract_strided_slice %133 {offsets = [0, 0], sizes = [2, 128], strides = [1, 1]} : vector<8x128xf32> to vector<2x128xf32>
    %291 = arith.mulf %290, %282 : vector<2x128xf32>
    %292 = vector.extract_strided_slice %169 {offsets = [0, 0], sizes = [2, 128], strides = [1, 1]} : vector<8x128xf32> to vector<2x128xf32>
    %293 = arith.addf %291, %292 : vector<2x128xf32>
    %294 = vector.extract_strided_slice %232 {offsets = [0, 0], sizes = [2, 128], strides = [1, 1]} : vector<8x128xf32> to vector<2x128xf32>
    %295 = arith.mulf %293, %294 : vector<2x128xf32>
    %296 = vector.extract_strided_slice %137 {offsets = [0, 0], sizes = [2, 128], strides = [1, 1]} : vector<8x128xf32> to vector<2x128xf32>
    %297 = arith.mulf %296, %283 : vector<2x128xf32>
    %298 = vector.extract_strided_slice %177 {offsets = [0, 0], sizes = [2, 128], strides = [1, 1]} : vector<8x128xf32> to vector<2x128xf32>
    %299 = arith.addf %297, %298 : vector<2x128xf32>
    %300 = vector.extract_strided_slice %239 {offsets = [0, 0], sizes = [2, 128], strides = [1, 1]} : vector<8x128xf32> to vector<2x128xf32>
    %301 = arith.mulf %299, %300 : vector<2x128xf32>
    %302 = arith.addf %295, %301 : vector<2x128xf32>
    %303 = vector.extract_strided_slice %141 {offsets = [0, 0], sizes = [2, 128], strides = [1, 1]} : vector<8x128xf32> to vector<2x128xf32>
    %304 = arith.mulf %303, %284 : vector<2x128xf32>
    %305 = vector.extract_strided_slice %185 {offsets = [0, 0], sizes = [2, 128], strides = [1, 1]} : vector<8x128xf32> to vector<2x128xf32>
    %306 = arith.addf %304, %305 : vector<2x128xf32>
    %307 = vector.extract_strided_slice %246 {offsets = [0, 0], sizes = [2, 128], strides = [1, 1]} : vector<8x128xf32> to vector<2x128xf32>
    %308 = arith.mulf %306, %307 : vector<2x128xf32>
    %309 = arith.addf %302, %308 : vector<2x128xf32>
    %310 = vector.extract_strided_slice %145 {offsets = [0, 0], sizes = [2, 128], strides = [1, 1]} : vector<8x128xf32> to vector<2x128xf32>
    %311 = arith.mulf %310, %285 : vector<2x128xf32>
    %312 = vector.extract_strided_slice %193 {offsets = [0, 0], sizes = [2, 128], strides = [1, 1]} : vector<8x128xf32> to vector<2x128xf32>
    %313 = arith.addf %311, %312 : vector<2x128xf32>
    %314 = vector.extract_strided_slice %253 {offsets = [0, 0], sizes = [2, 128], strides = [1, 1]} : vector<8x128xf32> to vector<2x128xf32>
    %315 = arith.mulf %313, %314 : vector<2x128xf32>
    %316 = arith.addf %309, %315 : vector<2x128xf32>
    %317 = vector.extract_strided_slice %149 {offsets = [0, 0], sizes = [2, 128], strides = [1, 1]} : vector<8x128xf32> to vector<2x128xf32>
    %318 = arith.mulf %317, %286 : vector<2x128xf32>
    %319 = vector.extract_strided_slice %201 {offsets = [0, 0], sizes = [2, 128], strides = [1, 1]} : vector<8x128xf32> to vector<2x128xf32>
    %320 = arith.addf %318, %319 : vector<2x128xf32>
    %321 = vector.extract_strided_slice %260 {offsets = [0, 0], sizes = [2, 128], strides = [1, 1]} : vector<8x128xf32> to vector<2x128xf32>
    %322 = arith.mulf %320, %321 : vector<2x128xf32>
    %323 = arith.addf %316, %322 : vector<2x128xf32>
    %324 = vector.extract_strided_slice %153 {offsets = [0, 0], sizes = [2, 128], strides = [1, 1]} : vector<8x128xf32> to vector<2x128xf32>
    %325 = arith.mulf %324, %287 : vector<2x128xf32>
    %326 = vector.extract_strided_slice %209 {offsets = [0, 0], sizes = [2, 128], strides = [1, 1]} : vector<8x128xf32> to vector<2x128xf32>
    %327 = arith.addf %325, %326 : vector<2x128xf32>
    %328 = vector.extract_strided_slice %267 {offsets = [0, 0], sizes = [2, 128], strides = [1, 1]} : vector<8x128xf32> to vector<2x128xf32>
    %329 = arith.mulf %327, %328 : vector<2x128xf32>
    %330 = arith.addf %323, %329 : vector<2x128xf32>
    %331 = vector.extract_strided_slice %157 {offsets = [0, 0], sizes = [2, 128], strides = [1, 1]} : vector<8x128xf32> to vector<2x128xf32>
    %332 = arith.mulf %331, %288 : vector<2x128xf32>
    %333 = vector.extract_strided_slice %217 {offsets = [0, 0], sizes = [2, 128], strides = [1, 1]} : vector<8x128xf32> to vector<2x128xf32>
    %334 = arith.addf %332, %333 : vector<2x128xf32>
    %335 = vector.extract_strided_slice %274 {offsets = [0, 0], sizes = [2, 128], strides = [1, 1]} : vector<8x128xf32> to vector<2x128xf32>
    %336 = arith.mulf %334, %335 : vector<2x128xf32>
    %337 = arith.addf %330, %336 : vector<2x128xf32>
    %338 = vector.extract_strided_slice %161 {offsets = [0, 0], sizes = [2, 128], strides = [1, 1]} : vector<8x128xf32> to vector<2x128xf32>
    %339 = arith.mulf %338, %289 : vector<2x128xf32>
    %340 = vector.extract_strided_slice %225 {offsets = [0, 0], sizes = [2, 128], strides = [1, 1]} : vector<8x128xf32> to vector<2x128xf32>
    %341 = arith.addf %339, %340 : vector<2x128xf32>
    %342 = vector.extract_strided_slice %281 {offsets = [0, 0], sizes = [2, 128], strides = [1, 1]} : vector<8x128xf32> to vector<2x128xf32>
    %343 = arith.mulf %341, %342 : vector<2x128xf32>
    %344 = arith.addf %337, %343 : vector<2x128xf32>
    %345 = vector.extract_strided_slice %344 {offsets = [0, 0], sizes = [2, 64], strides = [1, 1]} : vector<2x128xf32> to vector<2x64xf32>
    %346 = vector.extract_strided_slice %344 {offsets = [0, 64], sizes = [2, 64], strides = [1, 1]} : vector<2x128xf32> to vector<2x64xf32>
    %347 = vector.extract_strided_slice %133 {offsets = [2, 0], sizes = [2, 128], strides = [1, 1]} : vector<8x128xf32> to vector<2x128xf32>
    %348 = arith.mulf %347, %293 : vector<2x128xf32>
    %349 = vector.extract_strided_slice %169 {offsets = [2, 0], sizes = [2, 128], strides = [1, 1]} : vector<8x128xf32> to vector<2x128xf32>
    %350 = arith.addf %348, %349 : vector<2x128xf32>
    %351 = vector.extract_strided_slice %232 {offsets = [2, 0], sizes = [2, 128], strides = [1, 1]} : vector<8x128xf32> to vector<2x128xf32>
    %352 = arith.mulf %350, %351 : vector<2x128xf32>
    %353 = vector.extract_strided_slice %137 {offsets = [2, 0], sizes = [2, 128], strides = [1, 1]} : vector<8x128xf32> to vector<2x128xf32>
    %354 = arith.mulf %353, %299 : vector<2x128xf32>
    %355 = vector.extract_strided_slice %177 {offsets = [2, 0], sizes = [2, 128], strides = [1, 1]} : vector<8x128xf32> to vector<2x128xf32>
    %356 = arith.addf %354, %355 : vector<2x128xf32>
    %357 = vector.extract_strided_slice %239 {offsets = [2, 0], sizes = [2, 128], strides = [1, 1]} : vector<8x128xf32> to vector<2x128xf32>
    %358 = arith.mulf %356, %357 : vector<2x128xf32>
    %359 = arith.addf %352, %358 : vector<2x128xf32>
    %360 = vector.extract_strided_slice %141 {offsets = [2, 0], sizes = [2, 128], strides = [1, 1]} : vector<8x128xf32> to vector<2x128xf32>
    %361 = arith.mulf %360, %306 : vector<2x128xf32>
    %362 = vector.extract_strided_slice %185 {offsets = [2, 0], sizes = [2, 128], strides = [1, 1]} : vector<8x128xf32> to vector<2x128xf32>
    %363 = arith.addf %361, %362 : vector<2x128xf32>
    %364 = vector.extract_strided_slice %246 {offsets = [2, 0], sizes = [2, 128], strides = [1, 1]} : vector<8x128xf32> to vector<2x128xf32>
    %365 = arith.mulf %363, %364 : vector<2x128xf32>
    %366 = arith.addf %359, %365 : vector<2x128xf32>
    %367 = vector.extract_strided_slice %145 {offsets = [2, 0], sizes = [2, 128], strides = [1, 1]} : vector<8x128xf32> to vector<2x128xf32>
    %368 = arith.mulf %367, %313 : vector<2x128xf32>
    %369 = vector.extract_strided_slice %193 {offsets = [2, 0], sizes = [2, 128], strides = [1, 1]} : vector<8x128xf32> to vector<2x128xf32>
    %370 = arith.addf %368, %369 : vector<2x128xf32>
    %371 = vector.extract_strided_slice %253 {offsets = [2, 0], sizes = [2, 128], strides = [1, 1]} : vector<8x128xf32> to vector<2x128xf32>
    %372 = arith.mulf %370, %371 : vector<2x128xf32>
    %373 = arith.addf %366, %372 : vector<2x128xf32>
    %374 = vector.extract_strided_slice %149 {offsets = [2, 0], sizes = [2, 128], strides = [1, 1]} : vector<8x128xf32> to vector<2x128xf32>
    %375 = arith.mulf %374, %320 : vector<2x128xf32>
    %376 = vector.extract_strided_slice %201 {offsets = [2, 0], sizes = [2, 128], strides = [1, 1]} : vector<8x128xf32> to vector<2x128xf32>
    %377 = arith.addf %375, %376 : vector<2x128xf32>
    %378 = vector.extract_strided_slice %260 {offsets = [2, 0], sizes = [2, 128], strides = [1, 1]} : vector<8x128xf32> to vector<2x128xf32>
    %379 = arith.mulf %377, %378 : vector<2x128xf32>
    %380 = arith.addf %373, %379 : vector<2x128xf32>
    %381 = vector.extract_strided_slice %153 {offsets = [2, 0], sizes = [2, 128], strides = [1, 1]} : vector<8x128xf32> to vector<2x128xf32>
    %382 = arith.mulf %381, %327 : vector<2x128xf32>
    %383 = vector.extract_strided_slice %209 {offsets = [2, 0], sizes = [2, 128], strides = [1, 1]} : vector<8x128xf32> to vector<2x128xf32>
    %384 = arith.addf %382, %383 : vector<2x128xf32>
    %385 = vector.extract_strided_slice %267 {offsets = [2, 0], sizes = [2, 128], strides = [1, 1]} : vector<8x128xf32> to vector<2x128xf32>
    %386 = arith.mulf %384, %385 : vector<2x128xf32>
    %387 = arith.addf %380, %386 : vector<2x128xf32>
    %388 = vector.extract_strided_slice %157 {offsets = [2, 0], sizes = [2, 128], strides = [1, 1]} : vector<8x128xf32> to vector<2x128xf32>
    %389 = arith.mulf %388, %334 : vector<2x128xf32>
    %390 = vector.extract_strided_slice %217 {offsets = [2, 0], sizes = [2, 128], strides = [1, 1]} : vector<8x128xf32> to vector<2x128xf32>
    %391 = arith.addf %389, %390 : vector<2x128xf32>
    %392 = vector.extract_strided_slice %274 {offsets = [2, 0], sizes = [2, 128], strides = [1, 1]} : vector<8x128xf32> to vector<2x128xf32>
    %393 = arith.mulf %391, %392 : vector<2x128xf32>
    %394 = arith.addf %387, %393 : vector<2x128xf32>
    %395 = vector.extract_strided_slice %161 {offsets = [2, 0], sizes = [2, 128], strides = [1, 1]} : vector<8x128xf32> to vector<2x128xf32>
    %396 = arith.mulf %395, %341 : vector<2x128xf32>
    %397 = vector.extract_strided_slice %225 {offsets = [2, 0], sizes = [2, 128], strides = [1, 1]} : vector<8x128xf32> to vector<2x128xf32>
    %398 = arith.addf %396, %397 : vector<2x128xf32>
    %399 = vector.extract_strided_slice %281 {offsets = [2, 0], sizes = [2, 128], strides = [1, 1]} : vector<8x128xf32> to vector<2x128xf32>
    %400 = arith.mulf %398, %399 : vector<2x128xf32>
    %401 = arith.addf %394, %400 : vector<2x128xf32>
    %402 = vector.extract_strided_slice %401 {offsets = [0, 0], sizes = [2, 64], strides = [1, 1]} : vector<2x128xf32> to vector<2x64xf32>
    %403 = vector.extract_strided_slice %401 {offsets = [0, 64], sizes = [2, 64], strides = [1, 1]} : vector<2x128xf32> to vector<2x64xf32>
    %404 = vector.extract_strided_slice %133 {offsets = [4, 0], sizes = [2, 128], strides = [1, 1]} : vector<8x128xf32> to vector<2x128xf32>
    %405 = arith.mulf %404, %350 : vector<2x128xf32>
    %406 = vector.extract_strided_slice %169 {offsets = [4, 0], sizes = [2, 128], strides = [1, 1]} : vector<8x128xf32> to vector<2x128xf32>
    %407 = arith.addf %405, %406 : vector<2x128xf32>
    %408 = vector.extract_strided_slice %232 {offsets = [4, 0], sizes = [2, 128], strides = [1, 1]} : vector<8x128xf32> to vector<2x128xf32>
    %409 = arith.mulf %407, %408 : vector<2x128xf32>
    %410 = vector.extract_strided_slice %137 {offsets = [4, 0], sizes = [2, 128], strides = [1, 1]} : vector<8x128xf32> to vector<2x128xf32>
    %411 = arith.mulf %410, %356 : vector<2x128xf32>
    %412 = vector.extract_strided_slice %177 {offsets = [4, 0], sizes = [2, 128], strides = [1, 1]} : vector<8x128xf32> to vector<2x128xf32>
    %413 = arith.addf %411, %412 : vector<2x128xf32>
    %414 = vector.extract_strided_slice %239 {offsets = [4, 0], sizes = [2, 128], strides = [1, 1]} : vector<8x128xf32> to vector<2x128xf32>
    %415 = arith.mulf %413, %414 : vector<2x128xf32>
    %416 = arith.addf %409, %415 : vector<2x128xf32>
    %417 = vector.extract_strided_slice %141 {offsets = [4, 0], sizes = [2, 128], strides = [1, 1]} : vector<8x128xf32> to vector<2x128xf32>
    %418 = arith.mulf %417, %363 : vector<2x128xf32>
    %419 = vector.extract_strided_slice %185 {offsets = [4, 0], sizes = [2, 128], strides = [1, 1]} : vector<8x128xf32> to vector<2x128xf32>
    %420 = arith.addf %418, %419 : vector<2x128xf32>
    %421 = vector.extract_strided_slice %246 {offsets = [4, 0], sizes = [2, 128], strides = [1, 1]} : vector<8x128xf32> to vector<2x128xf32>
    %422 = arith.mulf %420, %421 : vector<2x128xf32>
    %423 = arith.addf %416, %422 : vector<2x128xf32>
    %424 = vector.extract_strided_slice %145 {offsets = [4, 0], sizes = [2, 128], strides = [1, 1]} : vector<8x128xf32> to vector<2x128xf32>
    %425 = arith.mulf %424, %370 : vector<2x128xf32>
    %426 = vector.extract_strided_slice %193 {offsets = [4, 0], sizes = [2, 128], strides = [1, 1]} : vector<8x128xf32> to vector<2x128xf32>
    %427 = arith.addf %425, %426 : vector<2x128xf32>
    %428 = vector.extract_strided_slice %253 {offsets = [4, 0], sizes = [2, 128], strides = [1, 1]} : vector<8x128xf32> to vector<2x128xf32>
    %429 = arith.mulf %427, %428 : vector<2x128xf32>
    %430 = arith.addf %423, %429 : vector<2x128xf32>
    %431 = vector.extract_strided_slice %149 {offsets = [4, 0], sizes = [2, 128], strides = [1, 1]} : vector<8x128xf32> to vector<2x128xf32>
    %432 = arith.mulf %431, %377 : vector<2x128xf32>
    %433 = vector.extract_strided_slice %201 {offsets = [4, 0], sizes = [2, 128], strides = [1, 1]} : vector<8x128xf32> to vector<2x128xf32>
    %434 = arith.addf %432, %433 : vector<2x128xf32>
    %435 = vector.extract_strided_slice %260 {offsets = [4, 0], sizes = [2, 128], strides = [1, 1]} : vector<8x128xf32> to vector<2x128xf32>
    %436 = arith.mulf %434, %435 : vector<2x128xf32>
    %437 = arith.addf %430, %436 : vector<2x128xf32>
    %438 = vector.extract_strided_slice %153 {offsets = [4, 0], sizes = [2, 128], strides = [1, 1]} : vector<8x128xf32> to vector<2x128xf32>
    %439 = arith.mulf %438, %384 : vector<2x128xf32>
    %440 = vector.extract_strided_slice %209 {offsets = [4, 0], sizes = [2, 128], strides = [1, 1]} : vector<8x128xf32> to vector<2x128xf32>
    %441 = arith.addf %439, %440 : vector<2x128xf32>
    %442 = vector.extract_strided_slice %267 {offsets = [4, 0], sizes = [2, 128], strides = [1, 1]} : vector<8x128xf32> to vector<2x128xf32>
    %443 = arith.mulf %441, %442 : vector<2x128xf32>
    %444 = arith.addf %437, %443 : vector<2x128xf32>
    %445 = vector.extract_strided_slice %157 {offsets = [4, 0], sizes = [2, 128], strides = [1, 1]} : vector<8x128xf32> to vector<2x128xf32>
    %446 = arith.mulf %445, %391 : vector<2x128xf32>
    %447 = vector.extract_strided_slice %217 {offsets = [4, 0], sizes = [2, 128], strides = [1, 1]} : vector<8x128xf32> to vector<2x128xf32>
    %448 = arith.addf %446, %447 : vector<2x128xf32>
    %449 = vector.extract_strided_slice %274 {offsets = [4, 0], sizes = [2, 128], strides = [1, 1]} : vector<8x128xf32> to vector<2x128xf32>
    %450 = arith.mulf %448, %449 : vector<2x128xf32>
    %451 = arith.addf %444, %450 : vector<2x128xf32>
    %452 = vector.extract_strided_slice %161 {offsets = [4, 0], sizes = [2, 128], strides = [1, 1]} : vector<8x128xf32> to vector<2x128xf32>
    %453 = arith.mulf %452, %398 : vector<2x128xf32>
    %454 = vector.extract_strided_slice %225 {offsets = [4, 0], sizes = [2, 128], strides = [1, 1]} : vector<8x128xf32> to vector<2x128xf32>
    %455 = arith.addf %453, %454 : vector<2x128xf32>
    %456 = vector.extract_strided_slice %281 {offsets = [4, 0], sizes = [2, 128], strides = [1, 1]} : vector<8x128xf32> to vector<2x128xf32>
    %457 = arith.mulf %455, %456 : vector<2x128xf32>
    %458 = arith.addf %451, %457 : vector<2x128xf32>
    %459 = vector.extract_strided_slice %458 {offsets = [0, 0], sizes = [2, 64], strides = [1, 1]} : vector<2x128xf32> to vector<2x64xf32>
    %460 = vector.extract_strided_slice %458 {offsets = [0, 64], sizes = [2, 64], strides = [1, 1]} : vector<2x128xf32> to vector<2x64xf32>
    %461 = vector.extract_strided_slice %133 {offsets = [6, 0], sizes = [2, 128], strides = [1, 1]} : vector<8x128xf32> to vector<2x128xf32>
    %462 = arith.mulf %461, %407 : vector<2x128xf32>
    %463 = vector.extract_strided_slice %169 {offsets = [6, 0], sizes = [2, 128], strides = [1, 1]} : vector<8x128xf32> to vector<2x128xf32>
    %464 = arith.addf %462, %463 : vector<2x128xf32>
    %465 = vector.extract_strided_slice %232 {offsets = [6, 0], sizes = [2, 128], strides = [1, 1]} : vector<8x128xf32> to vector<2x128xf32>
    %466 = arith.mulf %464, %465 : vector<2x128xf32>
    %467 = vector.extract_strided_slice %137 {offsets = [6, 0], sizes = [2, 128], strides = [1, 1]} : vector<8x128xf32> to vector<2x128xf32>
    %468 = arith.mulf %467, %413 : vector<2x128xf32>
    %469 = vector.extract_strided_slice %177 {offsets = [6, 0], sizes = [2, 128], strides = [1, 1]} : vector<8x128xf32> to vector<2x128xf32>
    %470 = arith.addf %468, %469 : vector<2x128xf32>
    %471 = vector.extract_strided_slice %239 {offsets = [6, 0], sizes = [2, 128], strides = [1, 1]} : vector<8x128xf32> to vector<2x128xf32>
    %472 = arith.mulf %470, %471 : vector<2x128xf32>
    %473 = arith.addf %466, %472 : vector<2x128xf32>
    %474 = vector.extract_strided_slice %141 {offsets = [6, 0], sizes = [2, 128], strides = [1, 1]} : vector<8x128xf32> to vector<2x128xf32>
    %475 = arith.mulf %474, %420 : vector<2x128xf32>
    %476 = vector.extract_strided_slice %185 {offsets = [6, 0], sizes = [2, 128], strides = [1, 1]} : vector<8x128xf32> to vector<2x128xf32>
    %477 = arith.addf %475, %476 : vector<2x128xf32>
    %478 = vector.extract_strided_slice %246 {offsets = [6, 0], sizes = [2, 128], strides = [1, 1]} : vector<8x128xf32> to vector<2x128xf32>
    %479 = arith.mulf %477, %478 : vector<2x128xf32>
    %480 = arith.addf %473, %479 : vector<2x128xf32>
    %481 = vector.extract_strided_slice %145 {offsets = [6, 0], sizes = [2, 128], strides = [1, 1]} : vector<8x128xf32> to vector<2x128xf32>
    %482 = arith.mulf %481, %427 : vector<2x128xf32>
    %483 = vector.extract_strided_slice %193 {offsets = [6, 0], sizes = [2, 128], strides = [1, 1]} : vector<8x128xf32> to vector<2x128xf32>
    %484 = arith.addf %482, %483 : vector<2x128xf32>
    %485 = vector.extract_strided_slice %253 {offsets = [6, 0], sizes = [2, 128], strides = [1, 1]} : vector<8x128xf32> to vector<2x128xf32>
    %486 = arith.mulf %484, %485 : vector<2x128xf32>
    %487 = arith.addf %480, %486 : vector<2x128xf32>
    %488 = vector.extract_strided_slice %149 {offsets = [6, 0], sizes = [2, 128], strides = [1, 1]} : vector<8x128xf32> to vector<2x128xf32>
    %489 = arith.mulf %488, %434 : vector<2x128xf32>
    %490 = vector.extract_strided_slice %201 {offsets = [6, 0], sizes = [2, 128], strides = [1, 1]} : vector<8x128xf32> to vector<2x128xf32>
    %491 = arith.addf %489, %490 : vector<2x128xf32>
    %492 = vector.extract_strided_slice %260 {offsets = [6, 0], sizes = [2, 128], strides = [1, 1]} : vector<8x128xf32> to vector<2x128xf32>
    %493 = arith.mulf %491, %492 : vector<2x128xf32>
    %494 = arith.addf %487, %493 : vector<2x128xf32>
    %495 = vector.extract_strided_slice %153 {offsets = [6, 0], sizes = [2, 128], strides = [1, 1]} : vector<8x128xf32> to vector<2x128xf32>
    %496 = arith.mulf %495, %441 : vector<2x128xf32>
    %497 = vector.extract_strided_slice %209 {offsets = [6, 0], sizes = [2, 128], strides = [1, 1]} : vector<8x128xf32> to vector<2x128xf32>
    %498 = arith.addf %496, %497 : vector<2x128xf32>
    %499 = vector.extract_strided_slice %267 {offsets = [6, 0], sizes = [2, 128], strides = [1, 1]} : vector<8x128xf32> to vector<2x128xf32>
    %500 = arith.mulf %498, %499 : vector<2x128xf32>
    %501 = arith.addf %494, %500 : vector<2x128xf32>
    %502 = vector.extract_strided_slice %157 {offsets = [6, 0], sizes = [2, 128], strides = [1, 1]} : vector<8x128xf32> to vector<2x128xf32>
    %503 = arith.mulf %502, %448 : vector<2x128xf32>
    %504 = vector.extract_strided_slice %217 {offsets = [6, 0], sizes = [2, 128], strides = [1, 1]} : vector<8x128xf32> to vector<2x128xf32>
    %505 = arith.addf %503, %504 : vector<2x128xf32>
    %506 = vector.extract_strided_slice %274 {offsets = [6, 0], sizes = [2, 128], strides = [1, 1]} : vector<8x128xf32> to vector<2x128xf32>
    %507 = arith.mulf %505, %506 : vector<2x128xf32>
    %508 = arith.addf %501, %507 : vector<2x128xf32>
    %509 = vector.extract_strided_slice %161 {offsets = [6, 0], sizes = [2, 128], strides = [1, 1]} : vector<8x128xf32> to vector<2x128xf32>
    %510 = arith.mulf %509, %455 : vector<2x128xf32>
    %511 = vector.extract_strided_slice %225 {offsets = [6, 0], sizes = [2, 128], strides = [1, 1]} : vector<8x128xf32> to vector<2x128xf32>
    %512 = arith.addf %510, %511 : vector<2x128xf32>
    %513 = vector.extract_strided_slice %281 {offsets = [6, 0], sizes = [2, 128], strides = [1, 1]} : vector<8x128xf32> to vector<2x128xf32>
    %514 = arith.mulf %512, %513 : vector<2x128xf32>
    %515 = arith.addf %508, %514 : vector<2x128xf32>
    %516 = vector.extract_strided_slice %515 {offsets = [0, 0], sizes = [2, 64], strides = [1, 1]} : vector<2x128xf32> to vector<2x64xf32>
    %517 = vector.extract_strided_slice %515 {offsets = [0, 64], sizes = [2, 64], strides = [1, 1]} : vector<2x128xf32> to vector<2x64xf32>
    %518 = tpu.concatenate %345, %402, %459, %516 in 0 : vector<2x64xf32>, vector<2x64xf32>, vector<2x64xf32>, vector<2x64xf32> -> vector<8x64xf32>
    %519 = tpu.concatenate %517, %460, %403, %346 in 0 : vector<2x64xf32>, vector<2x64xf32>, vector<2x64xf32>, vector<2x64xf32> -> vector<8x64xf32>
    %520 = tpu.concatenate %518, %519 in 1 : vector<8x64xf32>, vector<8x64xf32> -> vector<8x128xf32>
    %521 = vector.broadcast %100 : vector<1x128xf32> to vector<8x128xf32>
    %522 = arith.mulf %71, %521 : vector<8x128xf32>
    %523 = arith.addf %520, %522 : vector<8x128xf32>
    %524 = arith.negf %36 : vector<8x128xf32>
    %525 = math.exp %524 : vector<8x128xf32>
    %cst_33 = arith.constant 1.000000e+00 : f32
    %526 = vector.broadcast %cst_33 : f32 to vector<8x128xf32>
    %527 = arith.addf %526, %525 : vector<8x128xf32>
    %528 = arith.divf %526, %527 : vector<8x128xf32>
    %529 = arith.mulf %36, %528 : vector<8x128xf32>
    %530 = arith.mulf %523, %529 : vector<8x128xf32>
    %c0_34 = arith.constant 0 : index
    %c0_35 = arith.constant 0 : index
    %531 = vector.load %arg6[%c0_34, %c0_35] : memref<128x32xf32, #tpu.memory_space<vmem>>, vector<128x32xf32>
    %532 = vector.extract_strided_slice %26 {offsets = [21, 0], sizes = [1, 32], strides = [1, 1]} : vector<28x256xf32> to vector<1x32xf32>
    %cst_36 = arith.constant dense<0.000000e+00> : vector<8x32xf32>
    %533 = tpu.matmul %530, %531, %cst_36 {dimension_numbers = #tpu.dot_dimension_numbers<[1], [0], [0], [1], [0, 0, 1, 1], [], []>} : vector<8x128xf32>, vector<128x32xf32>, vector<8x32xf32> -> vector<8x32xf32>
    %534 = vector.broadcast %532 : vector<1x32xf32> to vector<8x32xf32>
    %535 = arith.addf %533, %534 : vector<8x32xf32>
    %536 = arith.addf %25, %535 : vector<8x32xf32>
    %537 = vector.extract_strided_slice %26 {offsets = [22, 0], sizes = [1, 32], strides = [1, 1]} : vector<28x256xf32> to vector<1x32xf32>
    %538 = vector.extract_strided_slice %26 {offsets = [23, 0], sizes = [1, 32], strides = [1, 1]} : vector<28x256xf32> to vector<1x32xf32>
    %cst_37 = arith.constant dense<0.000000e+00> : vector<8xf32>
    %539 = vector.multi_reduction <add>, %536, %cst_37 [1] : vector<8x32xf32> to vector<8xf32>
    %540 = vector.shape_cast %539 : vector<8xf32> to vector<8x1xf32>
    %cst_38 = arith.constant 3.200000e+01 : f32
    %541 = vector.broadcast %cst_38 : f32 to vector<8x1xf32>
    %542 = arith.divf %540, %541 : vector<8x1xf32>
    %543 = vector.broadcast %542 : vector<8x1xf32> to vector<8x32xf32>
    %544 = arith.subf %536, %543 : vector<8x32xf32>
    %545 = arith.mulf %544, %544 : vector<8x32xf32>
    %cst_39 = arith.constant dense<0.000000e+00> : vector<8xf32>
    %546 = vector.multi_reduction <add>, %545, %cst_39 [1] : vector<8x32xf32> to vector<8xf32>
    %547 = vector.shape_cast %546 : vector<8xf32> to vector<8x1xf32>
    %cst_40 = arith.constant 3.200000e+01 : f32
    %548 = vector.broadcast %cst_40 : f32 to vector<8x1xf32>
    %549 = arith.divf %547, %548 : vector<8x1xf32>
    %cst_41 = arith.constant 9.99999974E-6 : f32
    %550 = vector.broadcast %cst_41 : f32 to vector<8x1xf32>
    %551 = arith.addf %549, %550 : vector<8x1xf32>
    %552 = math.rsqrt %551 : vector<8x1xf32>
    %553 = vector.broadcast %552 : vector<8x1xf32> to vector<8x32xf32>
    %554 = arith.mulf %544, %553 : vector<8x32xf32>
    %555 = vector.broadcast %537 : vector<1x32xf32> to vector<8x32xf32>
    %556 = arith.mulf %554, %555 : vector<8x32xf32>
    %557 = vector.broadcast %538 : vector<1x32xf32> to vector<8x32xf32>
    %558 = arith.addf %556, %557 : vector<8x32xf32>
    %c0_42 = arith.constant 0 : index
    %c0_43 = arith.constant 0 : index
    %559 = vector.load %arg7[%c0_42, %c0_43] : memref<32x64xf32, #tpu.memory_space<vmem>>, vector<32x64xf32>
    %560 = vector.extract_strided_slice %26 {offsets = [24, 0], sizes = [1, 64], strides = [1, 1]} : vector<28x256xf32> to vector<1x64xf32>
    %cst_44 = arith.constant dense<0.000000e+00> : vector<8x64xf32>
    %561 = tpu.matmul %558, %559, %cst_44 {dimension_numbers = #tpu.dot_dimension_numbers<[1], [0], [0], [1], [0, 0, 1, 1], [], []>} : vector<8x32xf32>, vector<32x64xf32>, vector<8x64xf32> -> vector<8x64xf32>
    %562 = vector.broadcast %560 : vector<1x64xf32> to vector<8x64xf32>
    %563 = arith.addf %561, %562 : vector<8x64xf32>
    %cst_45 = arith.constant 0.000000e+00 : f32
    %564 = vector.broadcast %cst_45 : f32 to vector<8x64xf32>
    %565 = arith.maximumf %563, %564 : vector<8x64xf32>
    %c0_46 = arith.constant 0 : index
    %c0_47 = arith.constant 0 : index
    %566 = vector.load %arg8[%c0_46, %c0_47] : memref<64x32xf32, #tpu.memory_space<vmem>>, vector<64x32xf32>
    %567 = vector.extract_strided_slice %26 {offsets = [25, 0], sizes = [1, 32], strides = [1, 1]} : vector<28x256xf32> to vector<1x32xf32>
    %cst_48 = arith.constant dense<0.000000e+00> : vector<8x32xf32>
    %568 = tpu.matmul %565, %566, %cst_48 {dimension_numbers = #tpu.dot_dimension_numbers<[1], [0], [0], [1], [0, 0, 1, 1], [], []>} : vector<8x64xf32>, vector<64x32xf32>, vector<8x32xf32> -> vector<8x32xf32>
    %569 = vector.broadcast %567 : vector<1x32xf32> to vector<8x32xf32>
    %570 = arith.addf %568, %569 : vector<8x32xf32>
    %571 = arith.addf %558, %570 : vector<8x32xf32>
    %572 = vector.extract_strided_slice %26 {offsets = [26, 0], sizes = [1, 32], strides = [1, 1]} : vector<28x256xf32> to vector<1x32xf32>
    %573 = vector.extract_strided_slice %26 {offsets = [27, 0], sizes = [1, 32], strides = [1, 1]} : vector<28x256xf32> to vector<1x32xf32>
    %cst_49 = arith.constant dense<0.000000e+00> : vector<8xf32>
    %574 = vector.multi_reduction <add>, %571, %cst_49 [1] : vector<8x32xf32> to vector<8xf32>
    %575 = vector.shape_cast %574 : vector<8xf32> to vector<8x1xf32>
    %cst_50 = arith.constant 3.200000e+01 : f32
    %576 = vector.broadcast %cst_50 : f32 to vector<8x1xf32>
    %577 = arith.divf %575, %576 : vector<8x1xf32>
    %578 = vector.broadcast %577 : vector<8x1xf32> to vector<8x32xf32>
    %579 = arith.subf %571, %578 : vector<8x32xf32>
    %580 = arith.mulf %579, %579 : vector<8x32xf32>
    %cst_51 = arith.constant dense<0.000000e+00> : vector<8xf32>
    %581 = vector.multi_reduction <add>, %580, %cst_51 [1] : vector<8x32xf32> to vector<8xf32>
    %582 = vector.shape_cast %581 : vector<8xf32> to vector<8x1xf32>
    %cst_52 = arith.constant 3.200000e+01 : f32
    %583 = vector.broadcast %cst_52 : f32 to vector<8x1xf32>
    %584 = arith.divf %582, %583 : vector<8x1xf32>
    %cst_53 = arith.constant 9.99999974E-6 : f32
    %585 = vector.broadcast %cst_53 : f32 to vector<8x1xf32>
    %586 = arith.addf %584, %585 : vector<8x1xf32>
    %587 = math.rsqrt %586 : vector<8x1xf32>
    %588 = vector.broadcast %587 : vector<8x1xf32> to vector<8x32xf32>
    %589 = arith.mulf %579, %588 : vector<8x32xf32>
    %590 = vector.broadcast %572 : vector<1x32xf32> to vector<8x32xf32>
    %591 = arith.mulf %589, %590 : vector<8x32xf32>
    %592 = vector.broadcast %573 : vector<1x32xf32> to vector<8x32xf32>
    %593 = arith.addf %591, %592 : vector<8x32xf32>
    %cst_54 = arith.constant dense<0.000000e+00> : vector<8xf32>
    %594 = vector.multi_reduction <add>, %593, %cst_54 [1] : vector<8x32xf32> to vector<8xf32>
    %595 = vector.shape_cast %594 : vector<8xf32> to vector<8x1xf32>
    %cst_55 = arith.constant 3.200000e+01 : f32
    %596 = vector.broadcast %cst_55 : f32 to vector<8x1xf32>
    %597 = arith.divf %595, %596 : vector<8x1xf32>
    %598 = vector.broadcast %597 : vector<8x1xf32> to vector<8x32xf32>
    %599 = arith.subf %593, %598 : vector<8x32xf32>
    %600 = arith.mulf %599, %599 : vector<8x32xf32>
    %cst_56 = arith.constant dense<0.000000e+00> : vector<8xf32>
    %601 = vector.multi_reduction <add>, %600, %cst_56 [1] : vector<8x32xf32> to vector<8xf32>
    %602 = vector.shape_cast %601 : vector<8xf32> to vector<8x1xf32>
    %cst_57 = arith.constant 3.200000e+01 : f32
    %603 = vector.broadcast %cst_57 : f32 to vector<8x1xf32>
    %604 = arith.divf %602, %603 : vector<8x1xf32>
    %cst_58 = arith.constant 9.99999974E-6 : f32
    %605 = vector.broadcast %cst_58 : f32 to vector<8x1xf32>
    %606 = arith.addf %604, %605 : vector<8x1xf32>
    %607 = math.rsqrt %606 : vector<8x1xf32>
    %608 = vector.broadcast %607 : vector<8x1xf32> to vector<8x32xf32>
    %609 = arith.mulf %599, %608 : vector<8x32xf32>
    %610 = vector.broadcast %2 : vector<1x32xf32> to vector<8x32xf32>
    %611 = arith.mulf %609, %610 : vector<8x32xf32>
    %612 = vector.broadcast %3 : vector<1x32xf32> to vector<8x32xf32>
    %613 = arith.addf %611, %612 : vector<8x32xf32>
    %c0_59 = arith.constant 0 : index
    %c0_60 = arith.constant 0 : index
    %614 = vector.load %arg2[%c0_59, %c0_60] : memref<32x4xf32, #tpu.memory_space<vmem>>, vector<32x4xf32>
    %cst_61 = arith.constant dense<0.000000e+00> : vector<8x4xf32>
    %615 = tpu.matmul %613, %614, %cst_61 {dimension_numbers = #tpu.dot_dimension_numbers<[1], [0], [0], [1], [0, 0, 1, 1], [], []>} : vector<8x32xf32>, vector<32x4xf32>, vector<8x4xf32> -> vector<8x4xf32>
    %616 = vector.broadcast %4 : vector<1x4xf32> to vector<8x4xf32>
    %617 = arith.addf %615, %616 : vector<8x4xf32>
    %618 = vector.broadcast %19 : vector<8x1xf32> to vector<8x4xf32>
    %619 = arith.mulf %617, %618 : vector<8x4xf32>
    %620 = vector.broadcast %9 : vector<8x1xf32> to vector<8x4xf32>
    %621 = arith.addf %619, %620 : vector<8x4xf32>
    %c0_62 = arith.constant 0 : index
    %c0_63 = arith.constant 0 : index
    %622 = vector.load %arg10[%c0_62, %c0_63] : memref<8x4xf32, #tpu.memory_space<vmem>>, vector<8x4xf32>
    tpu.vector_store %arg10[%c0_62, %c0_63], %621 {strides = array<i32>} : memref<8x4xf32, #tpu.memory_space<vmem>>, vector<8x4xf32>,
    return
  }
}

</mosaic_0001>

<bundles_post_ra>
// kernel: _lambda_.1
= control target key start
LH: loop header
LB: loop body
LE: loop exit
PB: predicated region body
PF: predicated region fallthrough
CT: control target
= control target key end

     0   :  { %vm37_vm0 = vcmask 64512   ;;  %v1762_v7 = vmov 0.0   ;;  %vm1763_vm1 = vmmov 0   ;;  %v60_v31 = vlaneseq  ;;  %s1765_s17 = smov 64   ;;  %s1768_s28 = smov 126   ;;  %s2459_s0 = inlined_call_operand.vmem [shape: f32[8,8], index: 0, kind: input, shape index: {}]   ;;  %s2460_s1 = inlined_call_operand.vmem [shape: f32[8,32], index: 1, kind: input, shape index: {}]   ;;  %s2461_s4 = inlined_call_operand.vmem [shape: f32[32,256], index: 4, kind: input, shape index: {}]   ;;  %s2462_s3 = inlined_call_operand.vmem [shape: f32[4,32], index: 3, kind: input, shape index: {}]   ;;  %s2463_s9 = inlined_call_operand.vmem [shape: f32[28,256], index: 9, kind: input, shape index: {}]   ;;  %s2464_s5 = inlined_call_operand.vmem [shape: f32[128,36], index: 5, kind: input, shape index: {}]   ;;  %s2465_s6 = inlined_call_operand.vmem [shape: f32[128,32], index: 6, kind: input, shape index: {}]   ;;  %s2466_s7 = inlined_call_operand.vmem [shape: f32[32,64], index: 7, kind: input, shape index: {}]   ;;  %s2467_s8 = inlined_call_operand.vmem [shape: f32[64,32], index: 8, kind: input, shape index: {}]   ;;  %s2468_s2 = inlined_call_operand.vmem [shape: f32[32,4], index: 2, kind: input, shape index: {}]   ;;  %s2469_s10 = inlined_call_operand.vmem [shape: f32[8,4], index: 10, kind: output, shape index: {}]  }
   0x1   :  { %v36_v0 = vld [vmem:[%s2459_s0] sm:$0xff]  ;;  %1465 = vmatprep.subr.mxu1 %v1762_v7  ;;  %1467 = vmatprep.mubr.msk.f32.mxu1 %vm1763_vm1, %v1762_v7  ;;  %v143_v9 = vld [vmem:[%s2461_s4 + $0x8] sm:$0xff]  ;;  %v145_v10 = vld [vmem:[%s2461_s4 + $0x18] sm:$0xff]  ;;  %vm158_vm4 = vcmask 261120   ;;  %v2472_v47 = vmov 0.0|0.0   ;;  %vm241_vm5 = vcmask 1045504  }
   0x2   :  { %v38_v1 = vsel %vm37_vm0, %v36_v0, 0.0  ;;  %v59_v8 = vld [vmem:[%s2460_s1] sm:$0xff]  ;;  %1502 = vmatprep.mubr.msk.f32.mxu0 %vm1763_vm1, %v1762_v7  ;;  %v1586_v11 = vpack.c.bf16 %v145_v10, %v143_v9  ;;  %v144_v21 = vld [vmem:[%s2461_s4 + $0x10] sm:$0xff]  ;;  %v147_v22 = vld [vmem:[%s2461_s4 + $0x28] sm:$0xff]  ;;  %v1888_v32 = vshrl.u32 %v60_v31, 7  ;;  %1594 = vmatprep.subr.bf16.mxu0 %v2472_v47  ;;  %vm237_vm6 = vcmask 523264  }
   0x3   :  { %39 = vadd.xlane.f32.xlu0 %v38_v1  ;;  %1466 = vmatpush3.msra.mxu1 %v59_v8  ;;  %v142_v20 = vld [vmem:[%s2461_s4] sm:$0xff]  ;;  %v149_v23 = vld [vmem:[%s2461_s4 + $0x38] sm:$0xff]  ;;  %v148_v29 = vld [vmem:[%s2461_s4 + $0x30] sm:$0xff]  ;;  %vm285_vm7 = vcmask 1043456   ;;  %vm299_vm8 = vcmask 1041408   ;;  %s1769_s29 = smov 112  }
   0x4   :  { %1587 = vmatprep.subr.bf16.mxu1 %v1586_v11  ;;  %v1588_v25 = vpack.c.bf16 %v144_v21, %v142_v20  ;;  %v1590_v27 = vpack.c.bf16 %v149_v23, %v147_v22  ;;  %v146_v28 = vld [vmem:[%s2461_s4 + $0x20] sm:$0xff]  ;;  %v1891_v33 = vsub.s32 0, %v1888_v32  ;;  %v138_v39 = vld [vmem:[%s2463_s9 + $0x8] sm:$0xff]  ;;  %v314_v48 = vld [vmem:[%s2464_s5 + $0x10] sm:$0xff]  ;;  %v1977_v10 = vsub.s32 2, %v1888_v32  ;;  %s1770_s30 = smov 116  }
   0x5   :  { %v1592_v30 = vpack.c.bf16 %v148_v29, %v146_v28  ;;  %v35_v34 = vld [vmem:[%s2462_s3] sm:$0xf]  ;;  %v313_v44 = vld [vmem:[%s2464_s5 + $0x8] sm:$0xff]  ;;  %v315_v49 = vld [vmem:[%s2464_s5 + $0x18] sm:$0xff]  ;;  %s1771_s11 = smov 118   ;;  %s1772_s12 = smov 108  }
   0x6   :  { %v63_v35 = vrot.slane %v35_v34, %v1891_v33  ;;  %v157_v40 = vrot.slane %v138_v39, %v1891_v33  ;;  %v312_v43 = vld [vmem:[%s2464_s5] sm:$0xff]  ;;  %v1598_v50 = vpack.c.bf16 %v315_v49, %v314_v48  ;;  %v317_v52 = vld [vmem:[%s2464_s5 + $0x28] sm:$0xff]  ;;  %v318_v54 = vld [vmem:[%s2464_s5 + $0x30] sm:$0xff]  ;;  %vm406_vm9 = vcmask 15360  }
   0x7   :  { %v1595_v46 = vpack.c.bf16 %v313_v44, %v312_v43  ;;  %v316_v51 = vld [vmem:[%s2464_s5 + $0x20] sm:$0xff]  ;;  %v319_v55 = vld [vmem:[%s2464_s5 + $0x38] sm:$0xff]  ;;  %v321_v58 = vld [vmem:[%s2464_s5 + $0x48] sm:$0xff]  ;;  %vm417_vm10 = vcmask 31744  }
   0x8   :  { %v1601_v53 = vpack.c.bf16 %v317_v52, %v316_v51  ;;  %v1604_v56 = vpack.c.bf16 %v319_v55, %v318_v54  ;;  %v320_v57 = vld [vmem:[%s2464_s5 + $0x40] sm:$0xff]  ;;  %v322_v60 = vld [vmem:[%s2464_s5 + $0x50] sm:$0xff]  ;;  %v323_v61 = vld [vmem:[%s2464_s5 + $0x58] sm:$0xff] }
   0x9   :  { %1596 = vmatpush3.bf16.msra.mxu0 %v1595_v46  ;;  %v1607_v59 = vpack.c.bf16 %v321_v58, %v320_v57  ;;  %v1610_v62 = vpack.c.bf16 %v323_v61, %v322_v60  ;;  %v324_v63 = vld [vmem:[%s2464_s5 + $0x60] sm:$0xff]  ;;  %v2011_v57 = vld [vmem:[%s2463_s9 + $0x10] sm:$0xff]  ;;  %v1766_v61 = vmov 1  }
   0xa   :  { %1597 = vmatprep.subr.bf16.mxu0 %v2472_v47  ;;  %1693 = vset.pattern.permute.xlu0 %v1766_v61 }
   0xd   :  { %1599 = vmatpush3.bf16.msra.mxu0 %v1598_v50 }
   0xe   :  { %1600 = vmatprep.subr.bf16.mxu0 %v2472_v47 }
  0x11   :  { %1602 = vmatpush3.bf16.msra.mxu0 %v1601_v53 }
  0x12   :  { %1603 = vmatprep.subr.bf16.mxu0 %v2472_v47 }
  0x15   :  { %1605 = vmatpush3.bf16.msra.mxu0 %v1604_v56 }
  0x16   :  { %1606 = vmatprep.subr.bf16.mxu0 %v2472_v47 }
  0x19   :  { %1608 = vmatpush3.bf16.msra.mxu0 %v1607_v59  ;;  %v415_v59 = vrot.slane %v2011_v57, 6 }
  0x1a   :  { %1609 = vmatprep.subr.bf16.mxu0 %v2472_v47 }
  0x1d   :  { %1611 = vmatpush3.bf16.msra.mxu0 %v1610_v62  ;;  %v1767_v62 = vmov 0  }
  0x1e   :  { %1612 = vmatprep.subr.bf16.mxu0 %v2472_v47  ;;  %1691 = vset.pattern.permute.xlu1 %v1767_v62 }
  0x90   :  { %v40_v2 = vpop.xlane.xlu0 %39 }
  0x91   :  { %v1846_v3 = vmul.f32 0.125, %v40_v2  ;;  %v326_v2 = vld [vmem:[%s2464_s5 + $0x70] sm:$0xff] }
  0x93   :  { %v43_v4 = vsub.f32 %v36_v0, %v1846_v3  ;;  %v325_v0 = vld [vmem:[%s2464_s5 + $0x68] sm:$0xff] }
  0x94   :  { %v1613_v1 = vpack.c.bf16 %v325_v0, %v324_v63  ;;  %v2022_v63 = vld [vmem:[%s2463_s9 + $0x20] sm:$0xff] }
  0x95   :  { %v44_v5 = vmul.f32 %v43_v4, %v43_v4 }
  0x96   :  { %1614 = vmatpush3.bf16.msra.mxu0 %v1613_v1 }
  0x97   :  { %v45_v6 = vsel %vm37_vm0, %v44_v5, 0.0  ;;  %1615 = vmatprep.subr.bf16.mxu0 %v2472_v47 }
  0x98   :  { %46 = vadd.xlane.f32.xlu0 %v45_v6  ;;  %v137_v6 = vld [vmem:[%s2463_s9] sm:$0xff] }
  0x99   :  { %v153_v8 = vrot.slane %v137_v6, %v1891_v33  ;;  %v414_v58 = vrot.slane %v137_v6, 6 }
  0x9b   :  { %v416_v60 = vsel %vm299_vm8, %v414_v58, %v415_v59  ;;  %v986_v59 = vld [vmem:[%s2465_s6 + $0x20] sm:$0xff] }
 0x125   :  { %v47_v12 = vpop.xlane.xlu0 %46 }
 0x126   :  { %v48_v13 = vmul.f32 0.125, %v47_v12  ;;  %v1981_v12 = vsub.s32 1, %v1888_v32 }
 0x128   :  { %v49_v14 = vadd.f32 1e-05, %v48_v13  ;;  %v1984_v13 = vsub.s32 3, %v1888_v32  ;;  %v261_v20 = vrot.slane %v137_v6, %v1981_v12 }
 0x12a   :  { %1723 = vrsqrt.f32 %v49_v14  ;;  %vm52_vm2 = vcmp.eq.f32.partialorder %v49_v14, inf  ;;  %v55_v17 = vand.u32 2147483648, %v49_v14  ;;  %vm54_vm3 = vcmp.eq.f32.partialorder %v49_v14, 0.0 }
 0x12b   :  { %v280_v22 = vrot.slane %v137_v6, %v1984_v13 }
 0x134   :  { %v1724_v15 = vpop.eup %1723 }
 0x135   :  { %v51_v16 = vmul.f32 %v1724_v15, %v49_v14  ;;  %v1988_v15 = vsub.s32 4, %v1888_v32 }
 0x137   :  { %v53_v18 = vsel %vm52_vm2, %v49_v14, %v51_v16  ;;  %v267_v14 = vrot.slane %v137_v6, %v1977_v10  ;;  %v294_v23 = vrot.slane %v137_v6, %v1988_v15  ;;  %v331_v0 = vrot.slane %v2022_v63, %v1988_v15 }
 0x138   :  { %v1864_v19 = vsel %vm54_vm3, %v55_v17, %v53_v18  ;;  %v1992_v18 = vsub.s32 5, %v1888_v32 }
 0x139   :  { %1725 = vrcp.f32 %v1864_v19 }
 0x143   :  { %v1726_v24 = vpop.eup %1725 }
 0x144   :  { %v58_v26 = vmul.f32 %v1726_v24, %v43_v4  ;;  %v327_v4 = vld [vmem:[%s2464_s5 + $0x78] sm:$0xff] }
 0x145   :  { %v1616_v5 = vpack.c.bf16 %v327_v4, %v326_v2 }
 0x146   :  { %1468 = vmatmul.mubr.msk.f32.vlgmr.msra.gmra.mrb[0].mxu1 %vm37_vm0, %v58_v26  ;;  %v256_v26 = vrot.slane %v137_v6, %v1992_v18 }
 0x147   :  { %1589 = vmatpush1.bf16.msra.mxu1 %v1588_v25  ;;  %226 = vmatprep.mubr.f32.mxu1 %v1762_v7 }
 0x148   :  { %1591 = vmatprep.subr.bf16.mxu1 %v1590_v27  ;;  %1617 = vmatpush3.bf16.msra.mxu0 %v1616_v5 }
 0x149   :  { %1642 = vmatprep.subr.bf16.mxu0 %v2472_v47 }
 0x14b   :  { %1593 = vmatpush1.bf16.msra.mxu1 %v1592_v30 }
 0x14c   :  { %1505 = vmatprep.subr.mxu1 %v1762_v7 }
 0x219   :  { %v133_v36 = vpop.f32.mrb[0].mxu1 }
 0x21a   :  { %v1897_v37 = vadd.f32 %v133_v36, %v63_v35  ;;  %v1469_v38 = vpop.f32.mrb[1].mxu1 }
 0x21c   :  { %1400 = vmatmul.mubr.msk.f32.vlgmr.msra.gmra.mrb[2].mxu1 %vm158_vm4, %v1897_v37 }
 0x21d   :  { %1507 = vmatprep.mubr.msk.f32.mxu1 %vm1763_vm1, %v1762_v7  ;;  %1506 = vmatpush3.msk.msra.mxu1 %vm285_vm7, %v416_v60  ;;  %v987_v60 = vld [vmem:[%s2465_s6 + $0x28] sm:$0xff] }
 0x21e   :  { %1618 = vmatprep.subr.bf16.mxu1 %v2472_v47 }
 0x2ef   :  { %v228_v41 = vpop.f32.mrb[2].mxu1 }
 0x2f0   :  { %v230_v42 = vpop.f32.mrb[3].mxu1  ;;  %v1974_v9 = vadd.f32 %v228_v41, %v153_v8 }
 0x2f1   :  { %v1913_v45 = vadd.f32 %v230_v42, %v157_v40 }
 0x2f2   :  { %v239_v11 = vrot.slane %v1974_v9, 2 }
 0x2f3   :  { %245 = vrot.lane.b32.xlu1 %v1913_v45, %s1765_s17 }
 0x2f4   :  { %v242_v17 = vsel %vm241_vm5, 0.0, %v239_v11 }
 0x2f7   :  { %247 = vrot.lane.b32.xlu1 %v1762_v7, %s1765_s17 }
 0x365   :  { %v246_v16 = vpop.permute.xlu1 %245 }
 0x366   :  { %v251_v21 = vsel %vm237_vm6, %v242_v17, %v246_v16 }
 0x367   :  { %v268_v24 = vmul.f32 %v267_v14, %v251_v21  ;;  %v262_v27 = vmul.f32 %v261_v20, %v251_v21  ;;  %v281_v29 = vmul.f32 %v280_v22, %v251_v21  ;;  %v295_v36 = vmul.f32 %v294_v23, %v251_v21 }
 0x369   :  { %v248_v25 = vpop.permute.xlu1 %247  ;;  %v272_v35 = vrot.slane %v268_v24, 2  ;;  %v263_v40 = vadd.f32 %v262_v27, %v256_v26  ;;  %v286_v41 = vrot.slane %v281_v29, 4  ;;  %v300_v46 = vrot.slane %v295_v36, 6 }
 0x36a   :  { %v252_v28 = vsel %vm237_vm6, %v239_v11, %v248_v25  ;;  %v1775_v25 = vmov 4   ;;  %v1776_v26 = vmov 9   ;;  %v1777_v27 = vmov 13  }
 0x36b   :  { %v269_v30 = vmul.f32 %v267_v14, %v252_v28  ;;  %v282_v31 = vmul.f32 %v280_v22, %v252_v28  ;;  %v296_v34 = vmul.f32 %v294_v23, %v252_v28  ;;  %v1773_v23 = vmov 10  }
 0x36c   :  { %v1778_v28 = vmov 2   ;;  %v1781_v36 = vmov 11  }
 0x36d   :  { %v273_v38 = vrot.slane %v269_v30, 2  ;;  %v287_v39 = vrot.slane %v282_v31, 4  ;;  %v301_v43 = vrot.slane %v296_v34, 6  ;;  %v1779_v30 = vmov 7  }
 0x36e   :  { %v1780_v31 = vmov 3  }
 0x36f   :  { %v274_v42 = vsel %vm241_vm5, %v272_v35, %v273_v38  ;;  %v288_v48 = vsel %vm285_vm7, %v286_v41, %v287_v39  ;;  %v302_v50 = vsel %vm299_vm8, %v300_v46, %v301_v43  ;;  %v1782_v38 = vmov 12  }
 0x370   :  { %v276_v44 = vadd.f32 %v274_v42, %v263_v40  ;;  %v1783_v39 = vmov 5   ;;  %v1784_v40 = vmov 6   ;;  %v1785_v41 = vmov 14  }
 0x371   :  { %v1786_v42 = vmov 15  }
 0x372   :  { %v290_v49 = vadd.f32 %v288_v48, %v276_v44 }
 0x374   :  { %v304_v51 = vadd.f32 %v302_v50, %v290_v49  ;;  %v982_v50 = vld [vmem:[%s2465_s6] sm:$0xff] }
 0x376   :  { %v1401_v52 = vmul.f32 -1.442695, %v304_v51 }
 0x378   :  { %1727 = vpow2.f32 %v1401_v52 }
 0x382   :  { %v1728_v53 = vpop.eup %1727 }
 0x383   :  { %v308_v54 = vadd.f32 1.0, %v1728_v53  ;;  %v984_v53 = vld [vmem:[%s2465_s6 + $0x10] sm:$0xff] }
 0x385   :  { %1729 = vrcp.f32 %v308_v54  ;;  %v985_v54 = vld [vmem:[%s2465_s6 + $0x18] sm:$0xff] }
 0x38f   :  { %v1730_v55 = vpop.eup %1729 }
 0x390   :  { %v2003_v56 = vmul.f32 %v1730_v55, %v304_v51  ;;  %v983_v51 = vld [vmem:[%s2465_s6 + $0x8] sm:$0xff]  ;;  %v1622_v55 = vpack.c.bf16 %v985_v54, %v984_v53 }
 0x391   :  { %v1619_v52 = vpack.c.bf16 %v983_v51, %v982_v50 }
 0x392   :  { %1503 = vmatmul.mubr.f32.vlgmr.msra.gmra.mrb[0].mxu0 %v2003_v56  ;;  %v512_v54 = vrot.slane %v2003_v56, 6 }
 0x393   :  { %1553 = vmatprep.mubr.msk.f32.mxu0 %vm1763_vm1, %v1762_v7 }
 0x465   :  { %v398_v1 = vpop.f32.mrb[0].mxu0 }
 0x466   :  { %v399_v2 = vadd.f32 %v398_v1, %v331_v0  ;;  %v1504_v4 = vpop.f32.mrb[1].mxu0  ;;  %v988_v0 = vld [vmem:[%s2465_s6 + $0x30] sm:$0xff]  ;;  %v989_v1 = vld [vmem:[%s2465_s6 + $0x38] sm:$0xff] }
 0x467   :  { %v990_v4 = vld [vmem:[%s2465_s6 + $0x40] sm:$0xff] }
 0x468   :  { %527 = vrot.lane.b32.xlu1 %v399_v2, %s1768_s28  ;;  %403 = vrot.lane.b32.xlu0 %v399_v2, %s1769_s29  ;;  %v520_v5 = vrot.slane %v399_v2, 6  ;;  %v522_v6 = vrot.slane %v399_v2, 2 }
 0x46a   :  { %v524_v8 = vsel %vm299_vm8, %v520_v5, %v522_v6 }
 0x46b   :  { %v525_v11 = vsel %vm285_vm7, %v524_v8, %v520_v5  ;;  %v991_v5 = vld [vmem:[%s2465_s6 + $0x48] sm:$0xff]  ;;  %v992_v8 = vld [vmem:[%s2465_s6 + $0x50] sm:$0xff] }
 0x46c   :  { %v526_v14 = vsel %vm241_vm5, %v525_v11, %v522_v6  ;;  %v1631_v6 = vpack.c.bf16 %v991_v5, %v990_v4  ;;  %v993_v11 = vld [vmem:[%s2465_s6 + $0x58] sm:$0xff] }
 0x46d   :  { %531 = vrot.lane.b32.xlu1 %v526_v14, %s1770_s30 }
 0x471   :  { %535 = vrot.lane.b32.xlu1 %v399_v2, %s1771_s11 }
 0x475   :  { %234 = vrot.lane.b32.xlu1 %v1974_v9, %s1765_s17  ;;  %v1774_v9 = vmov 8  }
 0x479   :  { %538 = vrot.lane.b32.xlu1 %v526_v14, %s1772_s12 }
 0x4da   :  { %v528_v16 = vpop.permute.xlu1 %527  ;;  %v404_v17 = vpop.permute.xlu0 %403 }
 0x4db   :  { %v407_v20 = vsel %vm406_vm9, %v399_v2, %v404_v17  ;;  %v1628_v2 = vpack.c.bf16 %v989_v1, %v988_v0  ;;  %v994_v17 = vld [vmem:[%s2465_s6 + $0x60] sm:$0xff] }
 0x4dc   :  { %1508 = vmatmul.mubr.msk.f32.vlgmr.msra.gmra.mrb[4].mxu1 %vm417_vm10, %v407_v20  ;;  %v995_v20 = vld [vmem:[%s2465_s6 + $0x68] sm:$0xff] }
 0x4dd   :  { %1542 = vmatprep.mubr.msk.f32.mxu1 %vm1763_vm1, %v1762_v7  ;;  %1620 = vmatpush3.bf16.msra.mxu1 %v1619_v52 }
 0x4de   :  { %1621 = vmatprep.subr.bf16.mxu1 %v2472_v47 }
 0x4df   :  { %v532_v21 = vpop.permute.xlu1 %531 }
 0x4e0   :  { %v534_v22 = vsel %vm37_vm0, %v528_v16, %v532_v21  ;;  %v1634_v16 = vpack.c.bf16 %v993_v11, %v992_v8  ;;  %v1637_v21 = vpack.c.bf16 %v995_v20, %v994_v17  ;;  %v2470_v8 = vsub.s32 7, %v1888_v32 }
 0x4e1   :  { %611 = vperm.xlu0 %1693, %v534_v22   ;;  %601 = vperm.xlu1 %1691, %v534_v22   ;;  %v560_v20 = vrot.slane %v2011_v57, %v1992_v18 }
 0x4e2   :  { %1623 = vmatpush3.bf16.msra.mxu1 %v1622_v55  ;;  %v514_v55 = vrot.slane %v2003_v56, 2 }
 0x4e3   :  { %v536_v24 = vpop.permute.xlu1 %535  ;;  %1624 = vmatprep.subr.bf16.mxu1 %v2472_v47 }
 0x4e5   :  { %1696 = vset.pattern.permute.xlu0 %v1773_v23  ;;  %1692 = vset.pattern.permute.xlu1 %v1774_v9 }
 0x4e6   :  { %625 = vperm.xlu0 %1696, %v534_v22   ;;  %605 = vperm.xlu1 %1692, %v534_v22  }
 0x4e7   :  { %v2036_v29 = vpop.permute.xlu1 %234 }
 0x4ea   :  { %1699 = vset.pattern.permute.xlu0 %v1775_v25  ;;  %1694 = vset.pattern.permute.xlu1 %v1776_v26 }
 0x4eb   :  { %641 = vperm.xlu0 %1699, %v534_v22   ;;  %615 = vperm.xlu1 %1694, %v534_v22   ;;  %v539_v34 = vpop.permute.xlu1 %538 }
 0x4ec   :  { %v541_v35 = vsel %vm37_vm0, %v536_v24, %v539_v34  ;;  %v411_v24 = vrot.slane %v2011_v57, %v1977_v10 }
 0x4ef   :  { %1702 = vset.pattern.permute.xlu0 %v1777_v27  ;;  %1695 = vset.pattern.permute.xlu1 %v1778_v28 }
 0x4f0   :  { %655 = vperm.xlu0 %1702, %v534_v22   ;;  %621 = vperm.xlu1 %1695, %v534_v22  }
 0x4f4   :  { %1705 = vset.pattern.permute.xlu0 %v1779_v30  ;;  %1697 = vset.pattern.permute.xlu1 %v1780_v31 }
 0x4f5   :  { %671 = vperm.xlu0 %1705, %v534_v22   ;;  %631 = vperm.xlu1 %1697, %v534_v22  }
 0x4f9   :  { %1708 = vset.pattern.permute.xlu0 %v1774_v9  ;;  %1698 = vset.pattern.permute.xlu1 %v1781_v36  ;;  %v997_v9 = vld [vmem:[%s2465_s6 + $0x78] sm:$0xff] }
 0x4fa   :  { %635 = vperm.xlu1 %1698, %v534_v22   ;;  %686 = vperm.xlu0 %1708, %v541_v35  }
 0x4fe   :  { %1700 = vset.pattern.permute.xlu1 %v1782_v38  ;;  %1711 = vset.pattern.permute.xlu0 %v1778_v28 }
 0x4ff   :  { %645 = vperm.xlu1 %1700, %v534_v22   ;;  %700 = vperm.xlu0 %1711, %v541_v35  }
 0x503   :  { %1701 = vset.pattern.permute.xlu1 %v1783_v39  ;;  %1713 = vset.pattern.permute.xlu0 %v1780_v31 }
 0x504   :  { %651 = vperm.xlu1 %1701, %v534_v22   ;;  %709 = vperm.xlu0 %1713, %v541_v35  }
 0x508   :  { %1703 = vset.pattern.permute.xlu1 %v1784_v40  ;;  %1716 = vset.pattern.permute.xlu0 %v1782_v38 }
 0x509   :  { %661 = vperm.xlu1 %1703, %v534_v22   ;;  %722 = vperm.xlu0 %1716, %v541_v35  }
 0x50d   :  { %1704 = vset.pattern.permute.xlu1 %v1785_v41  ;;  %1719 = vset.pattern.permute.xlu0 %v1784_v40 }
 0x50e   :  { %665 = vperm.xlu1 %1704, %v534_v22   ;;  %736 = vperm.xlu0 %1719, %v541_v35  }
 0x512   :  { %1706 = vset.pattern.permute.xlu1 %v1786_v42  ;;  %1722 = vset.pattern.permute.xlu0 %v1786_v42 }
 0x513   :  { %675 = vperm.xlu1 %1706, %v534_v22   ;;  %749 = vperm.xlu0 %1722, %v541_v35  }
 0x517   :  { %1707 = vset.pattern.permute.xlu1 %v1767_v62 }
 0x518   :  { %682 = vperm.xlu1 %1707, %v541_v35  }
 0x51c   :  { %1709 = vset.pattern.permute.xlu1 %v1766_v61  ;;  %v1625_v61 = vpack.c.bf16 %v987_v60, %v986_v59 }
 0x51d   :  { %691 = vperm.xlu1 %1709, %v541_v35  }
 0x51e   :  { %1626 = vmatpush3.bf16.msra.mxu1 %v1625_v61  ;;  %v516_v61 = vsel %vm299_vm8, %v512_v54, %v514_v55 }
 0x51f   :  { %1627 = vmatprep.subr.bf16.mxu1 %v2472_v47  ;;  %v517_v5 = vsel %vm285_vm7, %v516_v61, %v512_v54 }
 0x521   :  { %1710 = vset.pattern.permute.xlu1 %v1776_v26 }
 0x522   :  { %695 = vperm.xlu1 %1710, %v541_v35   ;;  %1629 = vmatpush3.bf16.msra.mxu1 %v1628_v2 }
 0x523   :  { %1630 = vmatprep.subr.bf16.mxu1 %v2472_v47 }
 0x526   :  { %1712 = vset.pattern.permute.xlu1 %v1773_v23  ;;  %1632 = vmatpush3.bf16.msra.mxu1 %v1631_v6  ;;  %v996_v23 = vld [vmem:[%s2465_s6 + $0x70] sm:$0xff]  ;;  %v2471_v6 = vsub.s32 6, %v1888_v32 }
 0x527   :  { %704 = vperm.xlu1 %1712, %v541_v35   ;;  %1633 = vmatprep.subr.bf16.mxu1 %v2472_v47 }
 0x52a   :  { %1635 = vmatpush3.bf16.msra.mxu1 %v1634_v16 }
 0x52b   :  { %1714 = vset.pattern.permute.xlu1 %v1781_v36  ;;  %1636 = vmatprep.subr.bf16.mxu1 %v2472_v47 }
 0x52c   :  { %713 = vperm.xlu1 %1714, %v541_v35  }
 0x52e   :  { %1638 = vmatpush3.bf16.msra.mxu1 %v1637_v21  ;;  %v553_v21 = vrot.slane %v2011_v57, %v1988_v15  ;;  %v581_v15 = vrot.slane %v2022_v63, %v1891_v33 }
 0x52f   :  { %1639 = vmatprep.subr.bf16.mxu1 %v2472_v47 }
 0x530   :  { %1715 = vset.pattern.permute.xlu1 %v1775_v25  ;;  %v1640_v25 = vpack.c.bf16 %v997_v9, %v996_v23  ;;  %v518_v23 = vsel %vm241_vm5, %v517_v5, %v514_v55 }
 0x531   :  { %718 = vperm.xlu1 %1715, %v541_v35  }
 0x532   :  { %1641 = vmatpush3.bf16.msra.mxu1 %v1640_v25  ;;  %v546_v25 = vrot.slane %v2011_v57, %v1984_v13 }
 0x533   :  { %1660 = vmatprep.subr.bf16.mxu1 %v2472_v47 }
 0x535   :  { %1717 = vset.pattern.permute.xlu1 %v1783_v39 }
 0x536   :  { %727 = vperm.xlu1 %1717, %v541_v35  }
 0x53a   :  { %1718 = vset.pattern.permute.xlu1 %v1777_v27 }
 0x53b   :  { %731 = vperm.xlu1 %1718, %v541_v35  }
 0x53f   :  { %1720 = vset.pattern.permute.xlu1 %v1785_v41 }
 0x540   :  { %740 = vperm.xlu1 %1720, %v541_v35  }
 0x544   :  { %1721 = vset.pattern.permute.xlu1 %v1779_v30 }
 0x545   :  { %745 = vperm.xlu1 %1721, %v541_v35  }
 0x560   :  { %v2042_v43 = vpop.permute.xlu1 %601  ;;  %v2122_v38 = vpop.permute.xlu0 %611 }
 0x565   :  { %v2044_v44 = vpop.permute.xlu1 %605  ;;  %v2126_v40 = vpop.permute.xlu0 %625 }
 0x56a   :  { %v2046_v46 = vpop.permute.xlu1 %615  ;;  %v2130_v51 = vpop.permute.xlu0 %641 }
 0x56f   :  { %v2048_v48 = vpop.permute.xlu1 %621  ;;  %v2134_v53 = vpop.permute.xlu0 %655 }
 0x574   :  { %v2050_v49 = vpop.permute.xlu1 %631  ;;  %v2141_v0 = vpop.permute.xlu0 %671 }
 0x579   :  { %v2065_v58 = vpop.permute.xlu1 %635  ;;  %v687_v9 = vpop.permute.xlu0 %686 }
 0x57e   :  { %v2074_v62 = vpop.permute.xlu1 %645 }
 0x583   :  { %v2096_v14 = vpop.permute.xlu1 %651 }
 0x588   :  { %v2105_v22 = vpop.permute.xlu1 %661 }
 0x58d   :  { %v2117_v27 = vpop.permute.xlu1 %665 }
 0x592   :  { %v2120_v35 = vpop.permute.xlu1 %675 }
 0x597   :  { %v2124_v39 = vpop.permute.xlu1 %682 }
 0x59c   :  { %v2128_v42 = vpop.permute.xlu1 %691 }
 0x5a1   :  { %v2132_v52 = vpop.permute.xlu1 %695 }
 0x5a6   :  { %v2138_v59 = vpop.permute.xlu1 %704 }
 0x5ab   :  { %v714_v11 = vpop.permute.xlu1 %713 }
 0x5af   :  { %v489_v26 = vpop.f32.mrb[4].mxu1 }
 0x5b0   :  { %v490_v28 = vadd.f32 %v489_v26, %v411_v24  ;;  %v1509_v30 = vpop.f32.mrb[5].mxu1 }
 0x5b1   :  { %v574_v30 = vrot.slane %v2011_v57, %v2470_v8 }
 0x5b2   :  { %v494_v31 = vand.u32 2147483647, %v490_v28  ;;  %v493_v1 = vmax.f32 %v490_v28, 0.0  ;;  %v567_v28 = vrot.slane %v2011_v57, %v2471_v6  ;;  %v701_v57 = vpop.permute.xlu0 %700 }
 0x5b4   :  { %v495_v34 = vsub.f32 0.0, %v494_v31 }
 0x5b6   :  { %v496_v36 = vmul.f32 1.442695, %v495_v34  ;;  %v519_v34 = vsel %vm237_vm6, %v2003_v56, %v518_v23 }
 0x5b8   :  { %1731 = vpow2.f32 %v496_v36 }
 0x5c2   :  { %v1732_v41 = vpop.eup %1731 }
 0x5c3   :  { %v498_v50 = vadd.f32 1.0, %v1732_v41 }
 0x5c5   :  { %1733 = vlog2.f32 %v498_v50 }
 0x5cf   :  { %v1734_v60 = vpop.eup %1733 }
 0x5d0   :  { %v500_v2 = vmul.f32 0.6931472, %v1734_v60  ;;  %v719_v60 = vpop.permute.xlu1 %718 }
 0x5d2   :  { %v501_v4 = vadd.f32 %v500_v2, %v493_v1 }
 0x5d4   :  { %v503_v16 = vrot.slane %v501_v4, 6  ;;  %v505_v17 = vrot.slane %v501_v4, 2 }
 0x5d6   :  { %v507_v24 = vsel %vm299_vm8, %v503_v16, %v505_v17 }
 0x5d7   :  { %v508_v26 = vsel %vm285_vm7, %v507_v24, %v503_v16 }
 0x5d8   :  { %v509_v31 = vsel %vm241_vm5, %v508_v26, %v505_v17  ;;  %v2172_v17 = vsel %vm237_vm6, %v2036_v29, %v1913_v45 }
 0x5d9   :  { %v510_v36 = vsel %vm237_vm6, %v501_v4, %v509_v31  ;;  %v1404_v26 = vmul.f32 -1.442695, %v2172_v17  ;;  %v628_v31 = vsel %vm237_vm6, %v2048_v48, %v2126_v40 }
 0x5da   :  { %v2167_v41 = vmul.f32 %v519_v34, %v510_v36  ;;  %v547_v50 = vmul.f32 %v546_v25, %v510_v36  ;;  %v554_v54 = vmul.f32 %v553_v21, %v510_v36  ;;  %v561_v55 = vmul.f32 %v560_v20, %v510_v36  ;;  %v728_v25 = vpop.permute.xlu1 %727 }
 0x5db   :  { %v568_v61 = vmul.f32 %v567_v28, %v510_v36  ;;  %v575_v1 = vmul.f32 %v574_v30, %v510_v36  ;;  %v582_v2 = vmul.f32 %v581_v15, %v510_v36  ;;  %v588_v20 = vrot.slane %v2022_v63, %v1981_v12  ;;  %v710_v28 = vpop.permute.xlu0 %709 }
 0x5dc   :  { %v548_v5 = vmul.f32 1.442695, %v547_v50  ;;  %v555_v16 = vmul.f32 1.442695, %v554_v54  ;;  %v562_v24 = vmul.f32 1.442695, %v561_v55  ;;  %v595_v21 = vrot.slane %v2022_v63, %v1977_v10 }
 0x5dd   :  { %v569_v8 = vmul.f32 1.442695, %v568_v61  ;;  %v576_v4 = vmul.f32 1.442695, %v575_v1  ;;  %v583_v23 = vmul.f32 1.442695, %v582_v2  ;;  %v589_v45 = vmul.f32 %v588_v20, %v510_v36 }
 0x5de   :  { %1735 = vpow2.f32 %v548_v5  ;;  %v596_v29 = vmul.f32 %v595_v21, %v510_v36  ;;  %v608_v30 = vsel %vm237_vm6, %v2042_v43, %v2044_v44  ;;  %v618_v15 = vsel %vm237_vm6, %v2122_v38, %v2046_v46  ;;  %v732_v36 = vpop.permute.xlu1 %731 }
 0x5df   :  { %1737 = vpow2.f32 %v555_v16  ;;  %v648_v34 = vsel %vm237_vm6, %v2130_v51, %v2074_v62  ;;  %v658_v43 = vsel %vm237_vm6, %v2096_v14, %v2134_v53  ;;  %v2200_v44 = vsel %vm237_vm6, %v2105_v22, %v2117_v27 }
 0x5e0   :  { %1739 = vpow2.f32 %v562_v24  ;;  %v2204_v46 = vsel %vm237_vm6, %v2124_v39, %v687_v9  ;;  %v590_v48 = vmul.f32 1.442695, %v589_v45  ;;  %v2211_v62 = vsel %vm237_vm6, %v2128_v42, %v2132_v52 }
 0x5e1   :  { %1741 = vpow2.f32 %v569_v8  ;;  %v638_v8 = vsel %vm237_vm6, %v2050_v49, %v2065_v58  ;;  %v723_v58 = vpop.permute.xlu0 %722  ;;  %v2215_v14 = vsel %vm237_vm6, %v701_v57, %v2138_v59  ;;  %v2218_v22 = vsel %vm237_vm6, %v710_v28, %v714_v11 }
 0x5e2   :  { %1743 = vpow2.f32 %v576_v4  ;;  %v597_v27 = vmul.f32 1.442695, %v596_v29  ;;  %v2223_v39 = vmul.f32 %v608_v30, %v2167_v41  ;;  %v2227_v51 = vsel %vm237_vm6, %v719_v60, %v723_v58 }
 0x5e3   :  { %1745 = vpow2.f32 %v583_v23  ;;  %v2230_v42 = vsel %vm237_vm6, %v728_v25, %v732_v36  ;;  %v2235_v53 = vmul.f32 %v618_v15, %v2167_v41  ;;  %v2238_v59 = vmul.f32 %v628_v31, %v2167_v41 }
 0x5e4   :  { %1747 = vpow2.f32 %v1404_v26  ;;  %v2241_v11 = vmul.f32 %v638_v8, %v2167_v41  ;;  %v2247_v54 = vmul.f32 %v648_v34, %v2167_v41  ;;  %v2256_v57 = vmul.f32 %v658_v43, %v2167_v41 }
 0x5e5   :  { %1749 = vpow2.f32 %v590_v48 }
 0x5e6   :  { %1751 = vpow2.f32 %v597_v27 }
 0x5e8   :  { %v2206_v49 = vpop.eup %1735 }
 0x5e9   :  { %v2220_v38 = vpop.eup %1737  ;;  %v753_v40 = vmul.f32 0.0, %v2206_v49 }
 0x5ea   :  { %v2232_v52 = vpop.eup %1739  ;;  %v756_v9 = vmul.f32 0.0, %v2220_v38 }
 0x5eb   :  { %v2244_v50 = vpop.eup %1741  ;;  %v754_v55 = vadd.f32 %v753_v40, %v2223_v39  ;;  %v760_v60 = vmul.f32 0.0, %v2232_v52 }
 0x5ec   :  { %v2251_v61 = vpop.eup %1743  ;;  %v757_v1 = vadd.f32 %v756_v9, %v2235_v53  ;;  %v764_v2 = vmul.f32 0.0, %v2244_v50 }
 0x5ed   :  { %v2258_v5 = vpop.eup %1745  ;;  %v755_v16 = vmul.f32 %v754_v55, %v2204_v46  ;;  %v761_v24 = vadd.f32 %v760_v60, %v2238_v59  ;;  %v768_v4 = vmul.f32 0.0, %v2251_v61  ;;  %v785_v23 = vrot.slane %v754_v55, 6 }
 0x5ee   :  { %v758_v20 = vmul.f32 %v757_v1, %v2211_v62  ;;  %v765_v21 = vadd.f32 %v764_v2, %v2241_v11  ;;  %v791_v25 = vrot.slane %v757_v1, 6  ;;  %v772_v26 = vmul.f32 0.0, %v2258_v5  ;;  %v2266_v28 = vpop.eup %1747 }
 0x5ef   :  { %v762_v45 = vmul.f32 %v761_v24, %v2215_v14  ;;  %v769_v29 = vadd.f32 %v768_v4, %v2247_v54  ;;  %v787_v30 = vmul.f32 %v2206_v49, %v785_v23  ;;  %v798_v15 = vrot.slane %v761_v24, 6 }
 0x5f0   :  { %v759_v31 = vadd.f32 %v758_v20, %v755_v16  ;;  %v766_v8 = vmul.f32 %v765_v21, %v2218_v22  ;;  %v793_v34 = vmul.f32 %v2220_v38, %v791_v25  ;;  %v805_v36 = vrot.slane %v765_v21, 6  ;;  %v2286_v25 = vpop.eup %1749 }
 0x5f1   :  { %v788_v43 = vadd.f32 %v787_v30, %v2223_v39  ;;  %v800_v48 = vmul.f32 %v2232_v52, %v798_v15  ;;  %v812_v58 = vrot.slane %v769_v29, 6  ;;  %v770_v27 = vmul.f32 %v769_v29, %v2227_v51  ;;  %v2291_v15 = vpop.eup %1751 }
 0x5f2   :  { %v763_v40 = vadd.f32 %v762_v45, %v759_v31  ;;  %v794_v9 = vadd.f32 %v793_v34, %v2235_v53  ;;  %v807_v55 = vmul.f32 %v2244_v50, %v805_v36  ;;  %v2279_v60 = vadd.f32 %v772_v26, %v2256_v57 }
 0x5f3   :  { %v789_v1 = vmul.f32 %v788_v43, %v2204_v46  ;;  %v801_v2 = vadd.f32 %v800_v48, %v2238_v59  ;;  %v814_v16 = vmul.f32 %v2251_v61, %v812_v58  ;;  %v840_v24 = vrot.slane %v788_v43, 6 }
 0x5f4   :  { %v767_v4 = vadd.f32 %v766_v8, %v763_v40  ;;  %v795_v23 = vmul.f32 %v794_v9, %v2211_v62  ;;  %v808_v20 = vadd.f32 %v807_v55, %v2241_v11  ;;  %v846_v21 = vrot.slane %v794_v9, 6 }
 0x5f5   :  { %v802_v45 = vmul.f32 %v801_v2, %v2215_v14  ;;  %v815_v26 = vadd.f32 %v814_v16, %v2247_v54  ;;  %v842_v29 = vmul.f32 %v2206_v49, %v840_v24  ;;  %v853_v30 = vrot.slane %v801_v2, 6 }
 0x5f6   :  { %v796_v31 = vadd.f32 %v795_v23, %v789_v1  ;;  %v809_v34 = vmul.f32 %v808_v20, %v2218_v22  ;;  %v848_v8 = vmul.f32 %v2220_v38, %v846_v21  ;;  %v860_v36 = vrot.slane %v808_v20, 6 }
 0x5f7   :  { %v843_v43 = vadd.f32 %v842_v29, %v2223_v39  ;;  %v855_v48 = vmul.f32 %v2232_v52, %v853_v30  ;;  %v867_v58 = vrot.slane %v815_v26, 6  ;;  %v771_v40 = vadd.f32 %v770_v27, %v767_v4 }
 0x5f8   :  { %v803_v9 = vadd.f32 %v802_v45, %v796_v31  ;;  %v849_v55 = vadd.f32 %v848_v8, %v2235_v53  ;;  %v862_v16 = vmul.f32 %v2244_v50, %v860_v36  ;;  %v816_v2 = vmul.f32 %v815_v26, %v2227_v51 }
 0x5f9   :  { %v844_v1 = vmul.f32 %v843_v43, %v2204_v46  ;;  %v856_v24 = vadd.f32 %v855_v48, %v2238_v59  ;;  %v869_v23 = vmul.f32 %v2251_v61, %v867_v58  ;;  %v895_v20 = vrot.slane %v843_v43, 6 }
 0x5fa   :  { %v810_v21 = vadd.f32 %v809_v34, %v803_v9  ;;  %v850_v29 = vmul.f32 %v849_v55, %v2211_v62  ;;  %v863_v30 = vadd.f32 %v862_v16, %v2241_v11  ;;  %v901_v27 = vrot.slane %v849_v55, 6  ;;  %v741_v55 = vpop.permute.xlu1 %740 }
 0x5fb   :  { %v857_v4 = vmul.f32 %v856_v24, %v2215_v14  ;;  %v870_v45 = vadd.f32 %v869_v23, %v2247_v54  ;;  %v897_v31 = vmul.f32 %v2206_v49, %v895_v20  ;;  %v908_v26 = vrot.slane %v856_v24, 6 }
 0x5fc   :  { %v851_v8 = vadd.f32 %v850_v29, %v844_v1  ;;  %v864_v36 = vmul.f32 %v863_v30, %v2218_v22  ;;  %v903_v48 = vmul.f32 %v2220_v38, %v901_v27  ;;  %v915_v58 = vrot.slane %v863_v30, 6  ;;  %v737_v1 = vpop.permute.xlu0 %736 }
 0x5fd   :  { %v898_v34 = vadd.f32 %v897_v31, %v2223_v39  ;;  %v910_v43 = vmul.f32 %v2232_v52, %v908_v26  ;;  %v922_v9 = vrot.slane %v870_v45, 6  ;;  %v817_v16 = vadd.f32 %v816_v2, %v810_v21 }
 0x5fe   :  { %v858_v6 = vadd.f32 %v857_v4, %v851_v8  ;;  %v904_v47 = vadd.f32 %v903_v48, %v2235_v53  ;;  %v917_v23 = vmul.f32 %v2244_v50, %v915_v58  ;;  %v871_v49 = vmul.f32 %v870_v45, %v2227_v51 }
 0x5ff   :  { %v899_v24 = vmul.f32 %v898_v34, %v2204_v46  ;;  %v911_v38 = vadd.f32 %v910_v43, %v2238_v59  ;;  %v924_v20 = vmul.f32 %v2251_v61, %v922_v9  ;;  %v819_v39 = vrot.slane %v2279_v60, 6 }
 0x600   :  { %v865_v52 = vadd.f32 %v864_v36, %v858_v6  ;;  %v905_v2 = vmul.f32 %v904_v47, %v2211_v62  ;;  %v918_v21 = vadd.f32 %v917_v23, %v2241_v11  ;;  %v774_v53 = vmul.f32 %v2279_v60, %v2230_v42  ;;  %v746_v60 = vpop.permute.xlu1 %745 }
 0x601   :  { %v925_v50 = vadd.f32 %v924_v20, %v2247_v54  ;;  %v821_v29 = vmul.f32 %v2258_v5, %v819_v39  ;;  %v669_v46 = vmul.f32 %v2200_v44, %v2167_v41  ;;  %v776_v59 = vmul.f32 0.0, %v2286_v25 }
 0x602   :  { %v906_v61 = vadd.f32 %v905_v2, %v899_v24  ;;  %v912_v30 = vmul.f32 %v911_v38, %v2215_v14  ;;  %v872_v6 = vadd.f32 %v871_v49, %v865_v52  ;;  %v775_v27 = vadd.f32 %v774_v53, %v771_v40  ;;  %v750_v14 = vpop.permute.xlu0 %749 }
 0x603   :  { %v678_v47 = vsel %vm237_vm6, %v2141_v0, %v2120_v35  ;;  %v822_v62 = vadd.f32 %v821_v29, %v2256_v57  ;;  %v777_v11 = vadd.f32 %v776_v59, %v669_v46  ;;  %v780_v54 = vmul.f32 0.0, %v2291_v15 }
 0x604   :  { %v913_v4 = vadd.f32 %v912_v30, %v906_v61  ;;  %v919_v44 = vmul.f32 %v918_v21, %v2218_v22  ;;  %v743_v45 = vsel %vm237_vm6, %v737_v1, %v741_v55  ;;  %v679_v31 = vmul.f32 %v678_v47, %v2167_v41 }
 0x605   :  { %v874_v26 = vrot.slane %v822_v62, 6  ;;  %v823_v40 = vmul.f32 %v822_v62, %v2230_v42  ;;  %v826_v8 = vrot.slane %v777_v11, 6  ;;  %v778_v36 = vmul.f32 %v777_v11, %v743_v45 }
 0x606   :  { %v920_v35 = vadd.f32 %v919_v44, %v913_v4  ;;  %v926_v0 = vmul.f32 %v925_v50, %v2227_v51  ;;  %v781_v48 = vadd.f32 %v780_v54, %v679_v31  ;;  %v752_v58 = vsel %vm237_vm6, %v746_v60, %v750_v14 }
 0x607   :  { %v876_v34 = vmul.f32 %v2258_v5, %v874_v26  ;;  %v824_v43 = vadd.f32 %v823_v40, %v817_v16  ;;  %v828_v22 = vmul.f32 %v2286_v25, %v826_v8  ;;  %v779_v9 = vadd.f32 %v778_v36, %v775_v27 }
 0x608   :  { %v927_v55 = vadd.f32 %v926_v0, %v920_v35  ;;  %v833_v41 = vrot.slane %v781_v48, 6  ;;  %v782_v23 = vmul.f32 %v781_v48, %v752_v58 }
 0x609   :  { %v877_v49 = vadd.f32 %v876_v34, %v2256_v57  ;;  %v829_v1 = vadd.f32 %v828_v22, %v669_v46 }
 0x60a   :  { %v835_v24 = vmul.f32 %v2291_v15, %v833_v41  ;;  %v783_v38 = vadd.f32 %v782_v23, %v779_v9 }
 0x60b   :  { %v929_v20 = vrot.slane %v877_v49, 6  ;;  %v878_v51 = vmul.f32 %v877_v49, %v2230_v42  ;;  %v881_v39 = vrot.slane %v829_v1, 6  ;;  %v830_v52 = vmul.f32 %v829_v1, %v743_v45 }
 0x60c   :  { %v836_v2 = vadd.f32 %v835_v24, %v679_v31 }
 0x60d   :  { %v931_v16 = vmul.f32 %v2258_v5, %v929_v20  ;;  %v879_v21 = vadd.f32 %v878_v51, %v872_v6  ;;  %v883_v53 = vmul.f32 %v2286_v25, %v881_v39  ;;  %v831_v50 = vadd.f32 %v830_v52, %v824_v43 }
 0x60e   :  { %v888_v29 = vrot.slane %v836_v2, 6  ;;  %v837_v59 = vmul.f32 %v836_v2, %v752_v58  ;;  %v977_v5 = vadd.f32 1.0, %v2266_v28 }
 0x60f   :  { %v932_v61 = vadd.f32 %v931_v16, %v2256_v57  ;;  %v884_v30 = vadd.f32 %v883_v53, %v669_v46 }
 0x610   :  { %v890_v27 = vmul.f32 %v2291_v15, %v888_v29  ;;  %v838_v47 = vadd.f32 %v837_v59, %v831_v50  ;;  %1753 = vrcp.f32 %v977_v5  ;;  %v1097_v50 = vld [vmem:[%s2466_s7] sm:$0xff]  ;;  %v1100_v59 = vld [vmem:[%s2466_s7 + $0x18] sm:$0xff]  ;;  %v2476_v5 = vsub.s32 7, %v1888_v32 }
 0x611   :  { %v933_v62 = vmul.f32 %v932_v61, %v2230_v42  ;;  %v936_v11 = vrot.slane %v884_v30, 6  ;;  %v885_v54 = vmul.f32 %v884_v30, %v743_v45  ;;  %v2474_v30 = vmov 0.0|0.0  }
 0x612   :  { %v891_v60 = vadd.f32 %v890_v27, %v679_v31  ;;  %v949_v4 = vsel %vm299_vm8, %v783_v38, %v838_v47 }
 0x613   :  { %v934_v6 = vadd.f32 %v933_v62, %v927_v55  ;;  %v938_v44 = vmul.f32 %v2286_v25, %v936_v11  ;;  %v886_v14 = vadd.f32 %v885_v54, %v879_v21  ;;  %v971_v25 = vrot.slane %v2022_v63, %v1984_v13 }
 0x614   :  { %v943_v26 = vrot.slane %v891_v60, 6  ;;  %v892_v40 = vmul.f32 %v891_v60, %v752_v58  ;;  %v959_v55 = vrot.slane %v838_v47, 6  ;;  %v2475_v11 = vsub.s32 6, %v1888_v32  ;;  %v1182_v32 = vld [vmem:[%s2467_s8 + $0x18] sm:$0xff] }
 0x615   :  { %v939_v57 = vadd.f32 %v938_v44, %v669_v46  ;;  %v962_v46 = vrot.slane %v783_v38, 2  ;;  %v972_v23 = vmul.f32 %v971_v25, %v2003_v56  ;;  %v1001_v38 = vrot.slane %v2022_v63, %v1992_v18  ;;  %v1098_v18 = vld [vmem:[%s2466_s7 + $0x8] sm:$0xff]  ;;  %v1179_v44 = vld [vmem:[%s2467_s8] sm:$0xff] }
 0x616   :  { %v945_v8 = vmul.f32 %v2291_v15, %v943_v26  ;;  %v893_v36 = vadd.f32 %v892_v40, %v886_v14  ;;  %v1643_v29 = vpack.c.bf16 %v1098_v18, %v1097_v50  ;;  %v1090_v54 = vrot.slane %v2022_v63, %v2475_v11  ;;  %v1180_v14 = vld [vmem:[%s2467_s8 + $0x8] sm:$0xff] }
 0x617   :  { %v940_v35 = vmul.f32 %v939_v57, %v743_v45  ;;  %v1649_v40 = vpack.c.bf16 %v1180_v14, %v1179_v44 }
 0x618   :  { %v946_v42 = vadd.f32 %v945_v8, %v679_v31  ;;  %v950_v0 = vsel %vm285_vm7, %v949_v4, %v893_v36  ;;  %v956_v9 = vrot.slane %v893_v36, 2  ;;  %1644 = vmatpush3.bf16.msra.mxu0 %v1643_v29  ;;  %v1181_v8 = vld [vmem:[%s2467_s8 + $0x10] sm:$0xff]  ;;  %v1183_v36 = vld [vmem:[%s2467_s8 + $0x20] sm:$0xff] }
 0x619   :  { %v941_v48 = vadd.f32 %v940_v35, %v934_v6  ;;  %1645 = vmatprep.subr.bf16.mxu0 %v2474_v30  ;;  %v1095_v6 = vrot.slane %v2022_v63, %v2476_v5  ;;  %v1652_v63 = vpack.c.bf16 %v1182_v32, %v1181_v8  ;;  %v1184_v35 = vld [vmem:[%s2467_s8 + $0x28] sm:$0xff]  ;;  %v1311_v29 = vld [vmem:[%s2468_s2] sm:$0xff] }
 0x61a   :  { %v947_v34 = vmul.f32 %v946_v42, %v752_v58  ;;  %v1754_v41 = vpop.eup %1753  ;;  %v1655_v42 = vpack.c.bf16 %v1184_v35, %v1183_v36 }
 0x61b   :  { %v980_v49 = vmul.f32 %v1754_v41, %v2172_v17 }
 0x61c   :  { %v948_v43 = vadd.f32 %v947_v34, %v941_v48  ;;  %v141_v34 = vld [vmem:[%s2463_s9 + $0x30] sm:$0xf] }
 0x61e   :  { %v951_v28 = vsel %vm241_vm5, %v950_v0, %v948_v43  ;;  %v953_v22 = vrot.slane %v948_v43, 6  ;;  %v1186_v0 = vld [vmem:[%s2467_s8 + $0x38] sm:$0xff]  ;;  %v1104_v43 = vrot.slane %v141_v34, %v1891_v33 }
 0x620   :  { %v964_v15 = vsel %vm299_vm8, %v953_v22, %v956_v9 }
 0x621   :  { %v965_v45 = vsel %vm285_vm7, %v964_v15, %v959_v55  ;;  %v1190_v55 = vrot.slane %v141_v34, %v1981_v12 }
 0x622   :  { %v966_v31 = vsel %vm241_vm5, %v965_v45, %v962_v46 }
 0x623   :  { %v967_v58 = vsel %vm237_vm6, %v951_v28, %v966_v31 }
 0x624   :  { %v973_v1 = vadd.f32 %v972_v23, %v967_v58 }
 0x626   :  { %v981_v24 = vmul.f32 %v980_v49, %v973_v1 }
 0x628   :  { %1543 = vmatmul.mubr.f32.vlgmr.msra.gmra.mrb[6].mxu1 %v981_v24 }
 0x629   :  { %1583 = vmatprep.mubr.msk.f32.mxu1 %vm1763_vm1, %v1762_v7 }
 0x6fb   :  { %v1068_v20 = vpop.f32.mrb[6].mxu1 }
 0x6fc   :  { %v1069_v51 = vadd.f32 %v1068_v20, %v1001_v38  ;;  %v1544_v39 = vpop.f32.mrb[7].mxu1 }
 0x6fe   :  { %v1072_v52 = vadd.f32 %v1069_v51, %v1897_v37  ;;  %v1099_v37 = vld [vmem:[%s2466_s7 + $0x10] sm:$0xff]  ;;  %v1281_v51 = vrot.slane %v141_v34, %v1977_v10 }
 0x6ff   :  { %v1646_v61 = vpack.c.bf16 %v1100_v59, %v1099_v37  ;;  %v1312_v59 = vld [vmem:[%s2468_s2 + $0x8] sm:$0xff] }
 0x700   :  { %v1073_v56 = vsel %vm158_vm4, %v1072_v52, 0.0 }
 0x701   :  { %1074 = vadd.xlane.f32.xlu1 %v1073_v56  ;;  %1647 = vmatpush3.bf16.msra.mxu0 %v1646_v61  ;;  %v1286_v56 = vrot.slane %v141_v34, %v1984_v13  ;;  %v1313_v61 = vld [vmem:[%s2468_s2 + $0x10] sm:$0xff] }
 0x702   :  { %1648 = vmatprep.subr.bf16.mxu0 %v2474_v30 }
 0x78e   :  { %v1075_v2 = vpop.xlane.xlu1 %1074 }
 0x78f   :  { %v1077_v16 = vmul.f32 0.03125, %v1075_v2 }
 0x791   :  { %v1078_v17 = vsub.f32 %v1072_v52, %v1077_v16 }
 0x793   :  { %v1079_v21 = vmul.f32 %v1078_v17, %v1078_v17 }
 0x795   :  { %v1080_v53 = vsel %vm158_vm4, %v1079_v21, 0.0 }
 0x796   :  { %1081 = vadd.xlane.f32.xlu0 %v1080_v53 }
 0x823   :  { %v1082_v27 = vpop.xlane.xlu0 %1081 }
 0x824   :  { %v1083_v47 = vmul.f32 0.03125, %v1082_v27  ;;  %v1661_v27 = vpack.c.bf16 %v1312_v59, %v1311_v29 }
 0x826   :  { %v1084_v62 = vadd.f32 1e-05, %v1083_v47  ;;  %v1314_v47 = vld [vmem:[%s2468_s2 + $0x18] sm:$0xff]  ;;  %1662 = vmatpush3.bf16.msra.mxu1 %v1661_v27 }
 0x827   :  { %1663 = vmatprep.subr.bf16.mxu1 %v2474_v30 }
 0x828   :  { %1755 = vrsqrt.f32 %v1084_v62  ;;  %v1664_v62 = vpack.c.bf16 %v1314_v47, %v1313_v61 }
 0x82a   :  { %1665 = vmatpush3.bf16.msra.mxu1 %v1664_v62 }
 0x832   :  { %v1756_v60 = vpop.eup %1755 }
 0x833   :  { %v1086_v4 = vmul.f32 %v1756_v60, %v1078_v17 }
 0x835   :  { %v1091_v26 = vmul.f32 %v1090_v54, %v1086_v4  ;;  %v1761_v4 = vld [vmem:[%s2462_s3] sm:$0xf] }
 0x836   :  { %v1304_v5 = vrot.slane %v1761_v4, %v1981_v12  ;;  %v1309_v44 = vrot.slane %v1761_v4, %v1977_v10 }
 0x837   :  { %v1096_v57 = vadd.f32 %v1095_v6, %v1091_v26 }
 0x839   :  { %1554 = vmatmul.mubr.msk.f32.vlgmr.msra.gmra.mrb[2].mxu0 %vm158_vm4, %v1096_v57 }
 0x83a   :  { %1650 = vmatpush3.bf16.msra.mxu0 %v1649_v40  ;;  %1572 = vmatprep.mubr.msk.f32.mxu0 %vm1763_vm1, %v1762_v7  ;;  %v1185_v7 = vld [vmem:[%s2467_s8 + $0x30] sm:$0xff] }
 0x83b   :  { %1651 = vmatprep.subr.bf16.mxu0 %v2474_v30  ;;  %v1658_v48 = vpack.c.bf16 %v1186_v0, %v1185_v7 }
 0x83e   :  { %1653 = vmatpush3.bf16.msra.mxu0 %v1652_v63 }
 0x83f   :  { %1654 = vmatprep.subr.bf16.mxu0 %v2474_v30 }
 0x842   :  { %1656 = vmatpush3.bf16.msra.mxu0 %v1655_v42 }
 0x843   :  { %1657 = vmatprep.subr.bf16.mxu0 %v2474_v30  ;;  %v1318_v30 = vrot.slane %v1761_v4, %v1984_v13 }
 0x846   :  { %1659 = vmatpush3.bf16.msra.mxu0 %v1658_v48 }
 0x90c   :  { %v1174_v28 = vpop.f32.mrb[2].mxu0 }
 0x90d   :  { %v1175_v22 = vadd.f32 %v1174_v28, %v1104_v43  ;;  %v1555_v9 = vpop.f32.mrb[3].mxu0 }
 0x90f   :  { %v1178_v25 = vmax.f32 %v1175_v22, 0.0 }
 0x911   :  { %1573 = vmatmul.mubr.msk.f32.vlgmr.msra.gmra.mrb[4].mxu0 %vm237_vm6, %v1178_v25 }
 0x9e4   :  { %v1260_v46 = vpop.f32.mrb[4].mxu0 }
 0x9e5   :  { %v1261_v15 = vadd.f32 %v1260_v46, %v1190_v55  ;;  %v1574_v41 = vpop.f32.mrb[5].mxu0 }
 0x9e7   :  { %v1264_v45 = vadd.f32 %v1261_v15, %v1096_v57 }
 0x9e9   :  { %v1265_v31 = vsel %vm158_vm4, %v1264_v45, 0.0 }
 0x9ea   :  { %1266 = vadd.xlane.f32.xlu1 %v1265_v31 }
 0xa77   :  { %v1267_v23 = vpop.xlane.xlu1 %1266 }
 0xa78   :  { %v1268_v58 = vmul.f32 0.03125, %v1267_v23 }
 0xa7a   :  { %v1269_v49 = vsub.f32 %v1264_v45, %v1268_v58 }
 0xa7c   :  { %v1270_v1 = vmul.f32 %v1269_v49, %v1269_v49 }
 0xa7e   :  { %v1271_v33 = vsel %vm158_vm4, %v1270_v1, 0.0 }
 0xa7f   :  { %1272 = vadd.xlane.f32.xlu0 %v1271_v33 }
 0xb0c   :  { %v1273_v24 = vpop.xlane.xlu0 %1272 }
 0xb0d   :  { %v1274_v38 = vmul.f32 0.03125, %v1273_v24 }
 0xb0f   :  { %v1275_v20 = vadd.f32 1e-05, %v1274_v38 }
 0xb11   :  { %1757 = vrsqrt.f32 %v1275_v20 }
 0xb1b   :  { %v1758_v39 = vpop.eup %1757 }
 0xb1c   :  { %v1277_v52 = vmul.f32 %v1758_v39, %v1269_v49 }
 0xb1e   :  { %v1282_v2 = vmul.f32 %v1281_v51, %v1277_v52 }
 0xb20   :  { %v1287_v16 = vadd.f32 %v1286_v56, %v1282_v2 }
 0xb22   :  { %v1288_v17 = vsel %vm158_vm4, %v1287_v16, 0.0 }
 0xb23   :  { %1289 = vadd.xlane.f32.xlu1 %v1288_v17 }
 0xbb0   :  { %v1290_v21 = vpop.xlane.xlu1 %1289 }
 0xbb1   :  { %v1291_v53 = vmul.f32 0.03125, %v1290_v21 }
 0xbb3   :  { %v1292_v50 = vsub.f32 %v1287_v16, %v1291_v53 }
 0xbb5   :  { %v1293_v18 = vmul.f32 %v1292_v50, %v1292_v50 }
 0xbb7   :  { %v1294_v37 = vsel %vm158_vm4, %v1293_v18, 0.0 }
 0xbb8   :  { %1295 = vadd.xlane.f32.xlu0 %v1294_v37 }
 0xc45   :  { %v1296_v11 = vpop.xlane.xlu0 %1295 }
 0xc46   :  { %v1297_v54 = vmul.f32 0.03125, %v1296_v11 }
 0xc48   :  { %v1298_v60 = vadd.f32 1e-05, %v1297_v54 }
 0xc4a   :  { %1759 = vrsqrt.f32 %v1298_v60 }
 0xc54   :  { %v1760_v6 = vpop.eup %1759 }
 0xc55   :  { %v1300_v14 = vmul.f32 %v1760_v6, %v1292_v50 }
 0xc57   :  { %v1305_v26 = vmul.f32 %v1304_v5, %v1300_v14 }
 0xc59   :  { %v1310_v40 = vadd.f32 %v1309_v44, %v1305_v26 }
 0xc5b   :  { %1584 = vmatmul.mubr.msk.f32.vlgmr.msra.gmra.mrb[8].mxu1 %vm158_vm4, %v1310_v40 }
 0xd2e   :  { %v1388_v57 = vpop.f32.mrb[8].mxu1 }
 0xd2f   :  { %v1389_v8 = vadd.f32 %v1388_v57, %v1318_v30  ;;  %v1585_v32 = vpop.f32.mrb[9].mxu1 }
 0xd31   :  { %v1392_v63 = vmul.f32 %v1389_v8, %v1864_v19 }
 0xd33   :  { %v1393_v36 = vadd.f32 %v1392_v63, %v1846_v3 }
 0xd35   :  { %1394 = vst.msk [vmem:[%s2469_s10] sm:$0xff] %vm417_vm10, %v1393_v36 }

</bundles_post_ra>
